<compile_context>
chip_gen: v7x
topology: tpu7x:2x2x1
jax: 0.10.0
libtpu: 0.0.40
codegen_flags: <defaults>
</compile_context>

<pallas_src>
import functools
import math

import jax
import jax.numpy as jnp
from jax.experimental import pallas as pl
from jax.experimental.pallas import tpu as pltpu


# ----------------------------------------------------------------------------
# in-kernel helpers (elementwise math in f32; matmuls feed the MXU in bf16)
# ----------------------------------------------------------------------------

def _ln(x, g, b):
    # PyTorch nn.LayerNorm semantics: biased variance, eps = 1e-5
    mu = jnp.mean(x, axis=-1, keepdims=True)
    var = jnp.mean(jnp.square(x - mu), axis=-1, keepdims=True)
    return (x - mu) * jax.lax.rsqrt(var + 1e-5) * g + b


def _gelu(x):
    # exact (erf-based) GELU, matching torch.nn.GELU() default
    return 0.5 * x * (1.0 + jax.lax.erf(x * 0.7071067811865476))


def _mm(x_f32, w_bf16):
    # bf16 MXU matmul, f32 accumulation
    return jnp.dot(x_f32.astype(jnp.bfloat16), w_bf16,
                   preferred_element_type=jnp.float32)


# ----------------------------------------------------------------------------
# Pallas kernels
# ----------------------------------------------------------------------------

def _patch_embed_kernel(p_ref, g1_ref, b1_ref, w_ref, b_ref, g2_ref, b2_ref,
                        o_ref):
    # one batch element per grid step: LN(patch_dim) -> Linear -> LN(dim)
    x = p_ref[0].astype(jnp.float32)                       # (N, patch_dim)
    t = _ln(x, g1_ref[...], b1_ref[...])
    t = _mm(t, w_ref[...]) + b_ref[...]
    t = _ln(t, g2_ref[...], b2_ref[...])
    o_ref[0] = t.astype(o_ref.dtype)


def _layer_kernel(x_ref, ln1g_ref, ln1b_ref, wqkv_ref, wout_ref, bout_ref,
                  ln2g_ref, ln2b_ref, wff1_ref, bff1_ref, wff2_ref, bff2_ref,
                  o_ref, *, heads, dim_head, s_valid, scale):
    # one full transformer layer for one batch element, fully resident in VMEM
    S = x_ref.shape[1]
    d = x_ref.shape[2]
    inner = heads * dim_head
    x = x_ref[0].astype(jnp.float32)                       # (S, d) residual

    # ---- attention block (PreNorm) ----
    h = _ln(x, ln1g_ref[...], ln1b_ref[...])
    qkv = _mm(h, wqkv_ref[...])                            # (S, 3*inner), f32
    wout = wout_ref[...]                                   # (inner, d) bf16

    # mask padded key positions (sequence padded from s_valid up to S)
    key_ok = jax.lax.broadcasted_iota(jnp.int32, (S, S), 1) < s_valid

    acc = jnp.zeros((S, d), jnp.float32)
    for hd in range(heads):                                # static, unrolled
        o0 = hd * dim_head
        qh = qkv[:, o0:o0 + dim_head] * scale              # scale folded into q
        kh = qkv[:, inner + o0:inner + o0 + dim_head]
        vh = qkv[:, 2 * inner + o0:2 * inner + o0 + dim_head]
        # q @ k^T without materializing a transpose
        s = jax.lax.dot_general(
            qh.astype(jnp.bfloat16), kh.astype(jnp.bfloat16),
            dimension_numbers=(((1,), (1,)), ((), ())),
            preferred_element_type=jnp.float32)            # (S, S)
        s = jnp.where(key_ok, s, -1e30)
        m = jnp.max(s, axis=-1, keepdims=True)
        e = jnp.exp(s - m)
        p = e * pl.reciprocal(jnp.sum(e, axis=-1, keepdims=True), approx=True)
        oh = jnp.dot(p.astype(jnp.bfloat16), vh.astype(jnp.bfloat16),
                     preferred_element_type=jnp.float32)   # (S, dh)
        # fused head-merge + out projection:  attn @ W_out == sum_h oh @ W_out[h]
        acc = acc + jnp.dot(oh.astype(jnp.bfloat16),
                            wout[o0:o0 + dim_head, :],
                            preferred_element_type=jnp.float32)
    x = acc + bout_ref[...] + x                            # residual

    # ---- feed-forward block (PreNorm) ----
    h2 = _ln(x, ln2g_ref[...], ln2b_ref[...])
    f = _gelu(_mm(h2, wff1_ref[...]) + bff1_ref[...])
    x = _mm(f, wff2_ref[...]) + bff2_ref[...] + x          # residual

    o_ref[0] = x.astype(o_ref.dtype)                       # lane-dense (S, 128)


def _head_kernel(x_ref, g_ref, b_ref, w_ref, bias_ref, o_ref):
    x = x_ref[...].astype(jnp.float32)
    h = _ln(x, g_ref[...], b_ref[...])
    o_ref[...] = (_mm(h, w_ref[...]) + bias_ref[...]).astype(o_ref.dtype)


# ----------------------------------------------------------------------------
# pallas_call wrappers
# ----------------------------------------------------------------------------

def _rep(shape):
    # full-array block, replicated across the grid
    nd = len(shape)
    return pl.BlockSpec(shape, lambda b, _nd=nd: (0,) * _nd)


def patch_embed(patches, params):
    B, N, PD = patches.shape
    d = params["patch_ln2_g"].shape[-1]
    extra = (params["patch_ln1_g"], params["patch_ln1_b"], params["patch_w"],
             params["patch_b"], params["patch_ln2_g"], params["patch_ln2_b"])
    return pl.pallas_call(
        _patch_embed_kernel,
        out_shape=jax.ShapeDtypeStruct((B, N, d), jnp.float32),
        grid=(B,),
        in_specs=[pl.BlockSpec((1, N, PD), lambda b: (b, 0, 0))]
                 + [_rep(a.shape) for a in extra],
        out_specs=pl.BlockSpec((1, N, d), lambda b: (b, 0, 0)),
        compiler_params=pltpu.CompilerParams(dimension_semantics=("parallel",)),
    )(patches, *extra)


def transformer_layer(xseq, layer, *, heads, dim_head, s_valid, scale):
    B, S, d = xseq.shape
    extra = (layer["ln1_g"], layer["ln1_b"], layer["w_qkv"], layer["w_out"],
             layer["b_out"], layer["ln2_g"], layer["ln2_b"],
             layer["w_ff1"], layer["b_ff1"], layer["w_ff2"], layer["b_ff2"])
    kern = functools.partial(_layer_kernel, heads=heads, dim_head=dim_head,
                             s_valid=s_valid, scale=scale)
    return pl.pallas_call(
        kern,
        out_shape=jax.ShapeDtypeStruct((B, S, d), jnp.float32),
        grid=(B,),
        in_specs=[pl.BlockSpec((1, S, d), lambda b: (b, 0, 0))]
                 + [_rep(a.shape) for a in extra],
        out_specs=pl.BlockSpec((1, S, d), lambda b: (b, 0, 0)),
        compiler_params=pltpu.CompilerParams(dimension_semantics=("parallel",)),
    )(xseq, *extra)


def mlp_head(cls_tok, params):
    B, d = cls_tok.shape
    nc = params["head_b"].shape[-1]
    extra = (params["final_ln_g"], params["final_ln_b"],
             params["head_w"], params["head_b"])
    return pl.pallas_call(
        _head_kernel,
        out_shape=jax.ShapeDtypeStruct((B, nc), jnp.float32),
        grid=(1,),
        in_specs=[_rep(cls_tok.shape)] + [_rep(a.shape) for a in extra],
        out_specs=_rep((B, nc)),
    )(cls_tok, *extra)


# ----------------------------------------------------------------------------
# Parameters (deterministic synthetic init; matmul weights stored in bf16)
# ----------------------------------------------------------------------------

CFG = dict(
    image_size=64, patch_size=16, channels=3, num_classes=10,
    dim=128, depth=2, heads=4, dim_head=32, mlp_dim=256,
)


def _dense(key, fin, fout):
    bound = 1.0 / math.sqrt(fin)
    kw, kb = jax.random.split(key)
    w = jax.random.uniform(kw, (fin, fout), jnp.float32, -bound, bound)
    b = jax.random.uniform(kb, (1, fout), jnp.float32, -bound, bound)
    return w.astype(jnp.bfloat16), b                      # bf16 weight, f32 bias


def init_params(key, cfg):
    d = cfg["dim"]
    patch_dim = cfg["patch_size"] ** 2 * cfg["channels"]
    inner = cfg["heads"] * cfg["dim_head"]
    n_patches = (cfg["image_size"] // cfg["patch_size"]) ** 2
    keys = jax.random.split(key, 4 + cfg["depth"])

    params = {}
    params["patch_ln1_g"] = jnp.ones((1, patch_dim), jnp.float32)
    params["patch_ln1_b"] = jnp.zeros((1, patch_dim), jnp.float32)
    params["patch_w"], params["patch_b"] = _dense(keys[0], patch_dim, d)
    params["patch_ln2_g"] = jnp.ones((1, d), jnp.float32)
    params["patch_ln2_b"] = jnp.zeros((1, d), jnp.float32)
    params["pos_emb"] = 0.02 * jax.random.normal(
        keys[1], (1, n_patches + 1, d), jnp.float32)
    params["cls_token"] = 0.02 * jax.random.normal(keys[2], (1, 1, d), jnp.float32)

    layers = []
    for l in range(cfg["depth"]):
        k1, k2, k3, k4 = jax.random.split(keys[3 + l], 4)
        w_qkv, _ = _dense(k1, d, 3 * inner)               # to_qkv has no bias
        w_out, b_out = _dense(k2, inner, d)
        w_ff1, b_ff1 = _dense(k3, d, cfg["mlp_dim"])
        w_ff2, b_ff2 = _dense(k4, cfg["mlp_dim"], d)
        layers.append(dict(
            ln1_g=jnp.ones((1, d), jnp.float32), ln1_b=jnp.zeros((1, d), jnp.float32),
            w_qkv=w_qkv, w_out=w_out, b_out=b_out,
            ln2_g=jnp.ones((1, d), jnp.float32), ln2_b=jnp.zeros((1, d), jnp.float32),
            w_ff1=w_ff1, b_ff1=b_ff1, w_ff2=w_ff2, b_ff2=b_ff2,
        ))
    params["layers"] = layers

    params["final_ln_g"] = jnp.ones((1, d), jnp.float32)
    params["final_ln_b"] = jnp.zeros((1, d), jnp.float32)
    params["head_w"], params["head_b"] = _dense(keys[3 + cfg["depth"]], d,
                                                cfg["num_classes"])
    return params


# ----------------------------------------------------------------------------
# Forward pass
# ----------------------------------------------------------------------------

def vit_forward(params, x, cfg):
    B, C, H, W = x.shape
    p = cfg["patch_size"]
    d = cfg["dim"]
    heads, dh = cfg["heads"], cfg["dim_head"]
    hn, wn = H // p, W // p
    N = hn * wn
    S = N + 1
    S_pad = ((S + 7) // 8) * 8
    scale = dh ** -0.5

    # patch extraction 'b c (h p1) (w p2) -> b (h w) (p1 p2 c)' (one-time glue)
    patches = x.reshape(B, C, hn, p, wn, p).transpose(0, 2, 4, 3, 5, 1)
    patches = patches.reshape(B, N, p * p * C)

    tokens = patch_embed(patches, params)                  # (B, N, d)

    cls = jnp.broadcast_to(params["cls_token"], (B, 1, d))
    xseq = jnp.concatenate([cls, tokens], axis=1) + params["pos_emb"][:, :S]
    # pad sequence to a multiple of 8; padded keys are masked inside attention
    xseq = jnp.pad(xseq, ((0, 0), (0, S_pad - S), (0, 0)))
    # emb_dropout(0.1) / attn dropout(0.3) / ff dropout(0.3): identity (eval)

    for layer in params["layers"]:
        xseq = transformer_layer(xseq, layer, heads=heads, dim_head=dh,
                                 s_valid=S, scale=scale)

    # pool = 'cls', to_latent = Identity, mlp_head = LayerNorm + Linear
    cls_tok = xseq[:, 0]                                   # (B, d)
    return mlp_head(cls_tok, params)


# ----------------------------------------------------------------------------
# Main
# ----------------------------------------------------------------------------

if __name__ == "__main__":
    key = jax.random.PRNGKey(0)
    k_params, k_x = jax.random.split(key)

    params = init_params(k_params, CFG)
    B = 2
    x = jax.random.normal(
        k_x, (B, CFG["channels"], CFG["image_size"], CFG["image_size"]),
        jnp.float32)

    fwd = jax.jit(lambda p, xx: vit_forward(p, xx, CFG))
    logits = fwd(params, x)
    jax.block_until_ready(logits)

    assert logits.shape == (B, CFG["num_classes"])
    assert bool(jnp.all(jnp.isfinite(logits)))
    print("KERNEL_OK")
</pallas_src>

<mosaic_0001>
module attributes {stable_mosaic.version = 11 : i64} {
  func.func @_layer_kernel(%arg0: i32, %arg1: memref<1x24x128xf32, #tpu.memory_space<vmem>>, %arg2: memref<1x128xf32, #tpu.memory_space<vmem>>, %arg3: memref<1x128xf32, #tpu.memory_space<vmem>>, %arg4: memref<128x384xbf16, #tpu.memory_space<vmem>>, %arg5: memref<128x128xbf16, #tpu.memory_space<vmem>>, %arg6: memref<1x128xf32, #tpu.memory_space<vmem>>, %arg7: memref<1x128xf32, #tpu.memory_space<vmem>>, %arg8: memref<1x128xf32, #tpu.memory_space<vmem>>, %arg9: memref<128x256xbf16, #tpu.memory_space<vmem>>, %arg10: memref<1x256xf32, #tpu.memory_space<vmem>>, %arg11: memref<256x128xbf16, #tpu.memory_space<vmem>>, %arg12: memref<1x128xf32, #tpu.memory_space<vmem>>, %arg13: memref<1x24x128xf32, #tpu.memory_space<vmem>>) attributes {dimension_semantics = [#tpu.dimension_semantics<parallel>], iteration_bounds = array<i64: 2>, scalar_prefetch = 0 : i64, scratch_operands = 0 : i64, tpu.core_type = #tpu.core_type<tc>, window_params = [{transform_indices = @transform_0, window_bounds = array<i64: 1, 24, 128>}, {pipeline_mode = #tpu.pipeline_mode<synchronous>, transform_indices = @transform_1, window_bounds = array<i64: 1, 128>}, {pipeline_mode = #tpu.pipeline_mode<synchronous>, transform_indices = @transform_2, window_bounds = array<i64: 1, 128>}, {pipeline_mode = #tpu.pipeline_mode<synchronous>, transform_indices = @transform_3, window_bounds = array<i64: 128, 384>}, {pipeline_mode = #tpu.pipeline_mode<synchronous>, transform_indices = @transform_4, window_bounds = array<i64: 128, 128>}, {pipeline_mode = #tpu.pipeline_mode<synchronous>, transform_indices = @transform_5, window_bounds = array<i64: 1, 128>}, {pipeline_mode = #tpu.pipeline_mode<synchronous>, transform_indices = @transform_6, window_bounds = array<i64: 1, 128>}, {pipeline_mode = #tpu.pipeline_mode<synchronous>, transform_indices = @transform_7, window_bounds = array<i64: 1, 128>}, {pipeline_mode = #tpu.pipeline_mode<synchronous>, transform_indices = @transform_8, window_bounds = array<i64: 128, 256>}, {pipeline_mode = #tpu.pipeline_mode<synchronous>, transform_indices = @transform_9, window_bounds = array<i64: 1, 256>}, {pipeline_mode = #tpu.pipeline_mode<synchronous>, transform_indices = @transform_10, window_bounds = array<i64: 256, 128>}, {pipeline_mode = #tpu.pipeline_mode<synchronous>, transform_indices = @transform_11, window_bounds = array<i64: 1, 128>}, {transform_indices = @transform_12, window_bounds = array<i64: 1, 24, 128>}]} {
    %c0 = arith.constant 0 : index
    %c0_0 = arith.constant 0 : index
    %c0_1 = arith.constant 0 : index
    %0 = vector.load %arg1[%c0, %c0_0, %c0_1] : memref<1x24x128xf32, #tpu.memory_space<vmem>>, vector<1x24x128xf32>
    %1 = vector.shape_cast %0 : vector<1x24x128xf32> to vector<24x128xf32>
    %c0_2 = arith.constant 0 : index
    %c0_3 = arith.constant 0 : index
    %2 = vector.load %arg2[%c0_2, %c0_3] : memref<1x128xf32, #tpu.memory_space<vmem>>, vector<1x128xf32>
    %c0_4 = arith.constant 0 : index
    %c0_5 = arith.constant 0 : index
    %3 = vector.load %arg3[%c0_4, %c0_5] : memref<1x128xf32, #tpu.memory_space<vmem>>, vector<1x128xf32>
    %cst = arith.constant dense<0.000000e+00> : vector<24xf32>
    %4 = vector.multi_reduction <add>, %1, %cst [1] : vector<24x128xf32> to vector<24xf32>
    %5 = vector.shape_cast %4 : vector<24xf32> to vector<24x1xf32>
    %cst_6 = arith.constant 1.280000e+02 : f32
    %6 = vector.broadcast %cst_6 : f32 to vector<24x1xf32>
    %7 = arith.divf %5, %6 : vector<24x1xf32>
    %8 = vector.broadcast %7 : vector<24x1xf32> to vector<24x128xf32>
    %9 = arith.subf %1, %8 : vector<24x128xf32>
    %10 = arith.mulf %9, %9 : vector<24x128xf32>
    %cst_7 = arith.constant dense<0.000000e+00> : vector<24xf32>
    %11 = vector.multi_reduction <add>, %10, %cst_7 [1] : vector<24x128xf32> to vector<24xf32>
    %12 = vector.shape_cast %11 : vector<24xf32> to vector<24x1xf32>
    %cst_8 = arith.constant 1.280000e+02 : f32
    %13 = vector.broadcast %cst_8 : f32 to vector<24x1xf32>
    %14 = arith.divf %12, %13 : vector<24x1xf32>
    %15 = vector.broadcast %7 : vector<24x1xf32> to vector<24x128xf32>
    %16 = arith.subf %1, %15 : vector<24x128xf32>
    %cst_9 = arith.constant 9.99999974E-6 : f32
    %17 = vector.broadcast %cst_9 : f32 to vector<24x1xf32>
    %18 = arith.addf %14, %17 : vector<24x1xf32>
    %19 = math.rsqrt %18 : vector<24x1xf32>
    %20 = vector.broadcast %19 : vector<24x1xf32> to vector<24x128xf32>
    %21 = arith.mulf %16, %20 : vector<24x128xf32>
    %22 = vector.broadcast %2 : vector<1x128xf32> to vector<24x128xf32>
    %23 = arith.mulf %21, %22 : vector<24x128xf32>
    %24 = vector.broadcast %3 : vector<1x128xf32> to vector<24x128xf32>
    %25 = arith.addf %23, %24 : vector<24x128xf32>
    %c0_10 = arith.constant 0 : index
    %c0_11 = arith.constant 0 : index
    %26 = vector.load %arg4[%c0_10, %c0_11] : memref<128x384xbf16, #tpu.memory_space<vmem>>, vector<128x384xbf16>
    %27 = arith.truncf %25 : vector<24x128xf32> to vector<24x128xbf16>
    %cst_12 = arith.constant dense<0.000000e+00> : vector<24x384xf32>
    %28 = tpu.matmul %27, %26, %cst_12 {dimension_numbers = #tpu.dot_dimension_numbers<[1], [0], [0], [1], [0, 0, 1, 1], [], []>} : vector<24x128xbf16>, vector<128x384xbf16>, vector<24x384xf32> -> vector<24x384xf32>
    %c0_13 = arith.constant 0 : index
    %c0_14 = arith.constant 0 : index
    %29 = vector.load %arg5[%c0_13, %c0_14] : memref<128x128xbf16, #tpu.memory_space<vmem>>, vector<128x128xbf16>
    %30 = tpu.iota {dimensions = array<i32: 1>} : vector<24x24xi32>
    %c17_i32 = arith.constant 17 : i32
    %31 = vector.broadcast %c17_i32 : i32 to vector<24x24xi32>
    %32 = arith.cmpi slt, %30, %31 : vector<24x24xi32>
    %cst_15 = arith.constant 0.000000e+00 : f32
    %33 = vector.broadcast %cst_15 : f32 to vector<24x128xf32>
    %34 = vector.extract_strided_slice %28 {offsets = [0, 0], sizes = [24, 32], strides = [1, 1]} : vector<24x384xf32> to vector<24x32xf32>
    %cst_16 = arith.constant 0.176776692 : f32
    %35 = vector.broadcast %cst_16 : f32 to vector<24x32xf32>
    %36 = arith.mulf %34, %35 : vector<24x32xf32>
    %37 = vector.extract_strided_slice %28 {offsets = [0, 128], sizes = [24, 32], strides = [1, 1]} : vector<24x384xf32> to vector<24x32xf32>
    %38 = vector.extract_strided_slice %28 {offsets = [0, 256], sizes = [24, 32], strides = [1, 1]} : vector<24x384xf32> to vector<24x32xf32>
    %39 = arith.truncf %36 : vector<24x32xf32> to vector<24x32xbf16>
    %40 = arith.truncf %37 : vector<24x32xf32> to vector<24x32xbf16>
    %cst_17 = arith.constant dense<0.000000e+00> : vector<24x24xf32>
    %41 = tpu.matmul %39, %40, %cst_17 {dimension_numbers = #tpu.dot_dimension_numbers<[1], [1], [0], [0], [0, 0, 1, 0], [], []>} : vector<24x32xbf16>, vector<24x32xbf16>, vector<24x24xf32> -> vector<24x24xf32>
    %cst_18 = arith.constant -1.000000e+30 : f32
    %42 = vector.broadcast %cst_18 : f32 to vector<24x24xf32>
    %43 = arith.select %32, %41, %42 : vector<24x24xi1>, vector<24x24xf32>
    %cst_19 = arith.constant dense<0xFF800000> : vector<24xf32>
    %44 = vector.multi_reduction <maximumf>, %43, %cst_19 [1] : vector<24x24xf32> to vector<24xf32>
    %45 = vector.shape_cast %44 : vector<24xf32> to vector<24x1xf32>
    %46 = vector.broadcast %45 : vector<24x1xf32> to vector<24x24xf32>
    %47 = arith.subf %43, %46 : vector<24x24xf32>
    %48 = math.exp %47 : vector<24x24xf32>
    %cst_20 = arith.constant dense<0.000000e+00> : vector<24xf32>
    %49 = vector.multi_reduction <add>, %48, %cst_20 [1] : vector<24x24xf32> to vector<24xf32>
    %50 = vector.shape_cast %49 : vector<24xf32> to vector<24x1xf32>
    %51 = tpu.reciprocal %50 {approx = true} : vector<24x1xf32> -> vector<24x1xf32>
    %52 = vector.broadcast %51 : vector<24x1xf32> to vector<24x24xf32>
    %53 = arith.mulf %48, %52 : vector<24x24xf32>
    %54 = arith.truncf %53 : vector<24x24xf32> to vector<24x24xbf16>
    %55 = arith.truncf %38 : vector<24x32xf32> to vector<24x32xbf16>
    %cst_21 = arith.constant dense<0.000000e+00> : vector<24x32xf32>
    %56 = tpu.matmul %54, %55, %cst_21 {dimension_numbers = #tpu.dot_dimension_numbers<[1], [0], [0], [1], [0, 0, 1, 1], [], []>} : vector<24x24xbf16>, vector<24x32xbf16>, vector<24x32xf32> -> vector<24x32xf32>
    %57 = arith.truncf %56 : vector<24x32xf32> to vector<24x32xbf16>
    %58 = vector.extract_strided_slice %29 {offsets = [0, 0], sizes = [32, 128], strides = [1, 1]} : vector<128x128xbf16> to vector<32x128xbf16>
    %cst_22 = arith.constant dense<0.000000e+00> : vector<24x128xf32>
    %59 = tpu.matmul %57, %58, %cst_22 {dimension_numbers = #tpu.dot_dimension_numbers<[1], [0], [0], [1], [0, 0, 1, 1], [], []>} : vector<24x32xbf16>, vector<32x128xbf16>, vector<24x128xf32> -> vector<24x128xf32>
    %60 = arith.addf %33, %59 : vector<24x128xf32>
    %61 = vector.extract_strided_slice %28 {offsets = [0, 32], sizes = [24, 32], strides = [1, 1]} : vector<24x384xf32> to vector<24x32xf32>
    %cst_23 = arith.constant 0.176776692 : f32
    %62 = vector.broadcast %cst_23 : f32 to vector<24x32xf32>
    %63 = arith.mulf %61, %62 : vector<24x32xf32>
    %64 = vector.extract_strided_slice %28 {offsets = [0, 160], sizes = [24, 32], strides = [1, 1]} : vector<24x384xf32> to vector<24x32xf32>
    %65 = vector.extract_strided_slice %28 {offsets = [0, 288], sizes = [24, 32], strides = [1, 1]} : vector<24x384xf32> to vector<24x32xf32>
    %66 = arith.truncf %63 : vector<24x32xf32> to vector<24x32xbf16>
    %67 = arith.truncf %64 : vector<24x32xf32> to vector<24x32xbf16>
    %cst_24 = arith.constant dense<0.000000e+00> : vector<24x24xf32>
    %68 = tpu.matmul %66, %67, %cst_24 {dimension_numbers = #tpu.dot_dimension_numbers<[1], [1], [0], [0], [0, 0, 1, 0], [], []>} : vector<24x32xbf16>, vector<24x32xbf16>, vector<24x24xf32> -> vector<24x24xf32>
    %cst_25 = arith.constant -1.000000e+30 : f32
    %69 = vector.broadcast %cst_25 : f32 to vector<24x24xf32>
    %70 = arith.select %32, %68, %69 : vector<24x24xi1>, vector<24x24xf32>
    %cst_26 = arith.constant dense<0xFF800000> : vector<24xf32>
    %71 = vector.multi_reduction <maximumf>, %70, %cst_26 [1] : vector<24x24xf32> to vector<24xf32>
    %72 = vector.shape_cast %71 : vector<24xf32> to vector<24x1xf32>
    %73 = vector.broadcast %72 : vector<24x1xf32> to vector<24x24xf32>
    %74 = arith.subf %70, %73 : vector<24x24xf32>
    %75 = math.exp %74 : vector<24x24xf32>
    %cst_27 = arith.constant dense<0.000000e+00> : vector<24xf32>
    %76 = vector.multi_reduction <add>, %75, %cst_27 [1] : vector<24x24xf32> to vector<24xf32>
    %77 = vector.shape_cast %76 : vector<24xf32> to vector<24x1xf32>
    %78 = tpu.reciprocal %77 {approx = true} : vector<24x1xf32> -> vector<24x1xf32>
    %79 = vector.broadcast %78 : vector<24x1xf32> to vector<24x24xf32>
    %80 = arith.mulf %75, %79 : vector<24x24xf32>
    %81 = arith.truncf %80 : vector<24x24xf32> to vector<24x24xbf16>
    %82 = arith.truncf %65 : vector<24x32xf32> to vector<24x32xbf16>
    %cst_28 = arith.constant dense<0.000000e+00> : vector<24x32xf32>
    %83 = tpu.matmul %81, %82, %cst_28 {dimension_numbers = #tpu.dot_dimension_numbers<[1], [0], [0], [1], [0, 0, 1, 1], [], []>} : vector<24x24xbf16>, vector<24x32xbf16>, vector<24x32xf32> -> vector<24x32xf32>
    %84 = arith.truncf %83 : vector<24x32xf32> to vector<24x32xbf16>
    %85 = vector.extract_strided_slice %29 {offsets = [32, 0], sizes = [32, 128], strides = [1, 1]} : vector<128x128xbf16> to vector<32x128xbf16>
    %cst_29 = arith.constant dense<0.000000e+00> : vector<24x128xf32>
    %86 = tpu.matmul %84, %85, %cst_29 {dimension_numbers = #tpu.dot_dimension_numbers<[1], [0], [0], [1], [0, 0, 1, 1], [], []>} : vector<24x32xbf16>, vector<32x128xbf16>, vector<24x128xf32> -> vector<24x128xf32>
    %87 = arith.addf %60, %86 : vector<24x128xf32>
    %88 = vector.extract_strided_slice %28 {offsets = [0, 64], sizes = [24, 32], strides = [1, 1]} : vector<24x384xf32> to vector<24x32xf32>
    %cst_30 = arith.constant 0.176776692 : f32
    %89 = vector.broadcast %cst_30 : f32 to vector<24x32xf32>
    %90 = arith.mulf %88, %89 : vector<24x32xf32>
    %91 = vector.extract_strided_slice %28 {offsets = [0, 192], sizes = [24, 32], strides = [1, 1]} : vector<24x384xf32> to vector<24x32xf32>
    %92 = vector.extract_strided_slice %28 {offsets = [0, 320], sizes = [24, 32], strides = [1, 1]} : vector<24x384xf32> to vector<24x32xf32>
    %93 = arith.truncf %90 : vector<24x32xf32> to vector<24x32xbf16>
    %94 = arith.truncf %91 : vector<24x32xf32> to vector<24x32xbf16>
    %cst_31 = arith.constant dense<0.000000e+00> : vector<24x24xf32>
    %95 = tpu.matmul %93, %94, %cst_31 {dimension_numbers = #tpu.dot_dimension_numbers<[1], [1], [0], [0], [0, 0, 1, 0], [], []>} : vector<24x32xbf16>, vector<24x32xbf16>, vector<24x24xf32> -> vector<24x24xf32>
    %cst_32 = arith.constant -1.000000e+30 : f32
    %96 = vector.broadcast %cst_32 : f32 to vector<24x24xf32>
    %97 = arith.select %32, %95, %96 : vector<24x24xi1>, vector<24x24xf32>
    %cst_33 = arith.constant dense<0xFF800000> : vector<24xf32>
    %98 = vector.multi_reduction <maximumf>, %97, %cst_33 [1] : vector<24x24xf32> to vector<24xf32>
    %99 = vector.shape_cast %98 : vector<24xf32> to vector<24x1xf32>
    %100 = vector.broadcast %99 : vector<24x1xf32> to vector<24x24xf32>
    %101 = arith.subf %97, %100 : vector<24x24xf32>
    %102 = math.exp %101 : vector<24x24xf32>
    %cst_34 = arith.constant dense<0.000000e+00> : vector<24xf32>
    %103 = vector.multi_reduction <add>, %102, %cst_34 [1] : vector<24x24xf32> to vector<24xf32>
    %104 = vector.shape_cast %103 : vector<24xf32> to vector<24x1xf32>
    %105 = tpu.reciprocal %104 {approx = true} : vector<24x1xf32> -> vector<24x1xf32>
    %106 = vector.broadcast %105 : vector<24x1xf32> to vector<24x24xf32>
    %107 = arith.mulf %102, %106 : vector<24x24xf32>
    %108 = arith.truncf %107 : vector<24x24xf32> to vector<24x24xbf16>
    %109 = arith.truncf %92 : vector<24x32xf32> to vector<24x32xbf16>
    %cst_35 = arith.constant dense<0.000000e+00> : vector<24x32xf32>
    %110 = tpu.matmul %108, %109, %cst_35 {dimension_numbers = #tpu.dot_dimension_numbers<[1], [0], [0], [1], [0, 0, 1, 1], [], []>} : vector<24x24xbf16>, vector<24x32xbf16>, vector<24x32xf32> -> vector<24x32xf32>
    %111 = arith.truncf %110 : vector<24x32xf32> to vector<24x32xbf16>
    %112 = vector.extract_strided_slice %29 {offsets = [64, 0], sizes = [32, 128], strides = [1, 1]} : vector<128x128xbf16> to vector<32x128xbf16>
    %cst_36 = arith.constant dense<0.000000e+00> : vector<24x128xf32>
    %113 = tpu.matmul %111, %112, %cst_36 {dimension_numbers = #tpu.dot_dimension_numbers<[1], [0], [0], [1], [0, 0, 1, 1], [], []>} : vector<24x32xbf16>, vector<32x128xbf16>, vector<24x128xf32> -> vector<24x128xf32>
    %114 = arith.addf %87, %113 : vector<24x128xf32>
    %115 = vector.extract_strided_slice %28 {offsets = [0, 96], sizes = [24, 32], strides = [1, 1]} : vector<24x384xf32> to vector<24x32xf32>
    %cst_37 = arith.constant 0.176776692 : f32
    %116 = vector.broadcast %cst_37 : f32 to vector<24x32xf32>
    %117 = arith.mulf %115, %116 : vector<24x32xf32>
    %118 = vector.extract_strided_slice %28 {offsets = [0, 224], sizes = [24, 32], strides = [1, 1]} : vector<24x384xf32> to vector<24x32xf32>
    %119 = vector.extract_strided_slice %28 {offsets = [0, 352], sizes = [24, 32], strides = [1, 1]} : vector<24x384xf32> to vector<24x32xf32>
    %120 = arith.truncf %117 : vector<24x32xf32> to vector<24x32xbf16>
    %121 = arith.truncf %118 : vector<24x32xf32> to vector<24x32xbf16>
    %cst_38 = arith.constant dense<0.000000e+00> : vector<24x24xf32>
    %122 = tpu.matmul %120, %121, %cst_38 {dimension_numbers = #tpu.dot_dimension_numbers<[1], [1], [0], [0], [0, 0, 1, 0], [], []>} : vector<24x32xbf16>, vector<24x32xbf16>, vector<24x24xf32> -> vector<24x24xf32>
    %cst_39 = arith.constant -1.000000e+30 : f32
    %123 = vector.broadcast %cst_39 : f32 to vector<24x24xf32>
    %124 = arith.select %32, %122, %123 : vector<24x24xi1>, vector<24x24xf32>
    %cst_40 = arith.constant dense<0xFF800000> : vector<24xf32>
    %125 = vector.multi_reduction <maximumf>, %124, %cst_40 [1] : vector<24x24xf32> to vector<24xf32>
    %126 = vector.shape_cast %125 : vector<24xf32> to vector<24x1xf32>
    %127 = vector.broadcast %126 : vector<24x1xf32> to vector<24x24xf32>
    %128 = arith.subf %124, %127 : vector<24x24xf32>
    %129 = math.exp %128 : vector<24x24xf32>
    %cst_41 = arith.constant dense<0.000000e+00> : vector<24xf32>
    %130 = vector.multi_reduction <add>, %129, %cst_41 [1] : vector<24x24xf32> to vector<24xf32>
    %131 = vector.shape_cast %130 : vector<24xf32> to vector<24x1xf32>
    %132 = tpu.reciprocal %131 {approx = true} : vector<24x1xf32> -> vector<24x1xf32>
    %133 = vector.broadcast %132 : vector<24x1xf32> to vector<24x24xf32>
    %134 = arith.mulf %129, %133 : vector<24x24xf32>
    %135 = arith.truncf %134 : vector<24x24xf32> to vector<24x24xbf16>
    %136 = arith.truncf %119 : vector<24x32xf32> to vector<24x32xbf16>
    %cst_42 = arith.constant dense<0.000000e+00> : vector<24x32xf32>
    %137 = tpu.matmul %135, %136, %cst_42 {dimension_numbers = #tpu.dot_dimension_numbers<[1], [0], [0], [1], [0, 0, 1, 1], [], []>} : vector<24x24xbf16>, vector<24x32xbf16>, vector<24x32xf32> -> vector<24x32xf32>
    %138 = arith.truncf %137 : vector<24x32xf32> to vector<24x32xbf16>
    %139 = vector.extract_strided_slice %29 {offsets = [96, 0], sizes = [32, 128], strides = [1, 1]} : vector<128x128xbf16> to vector<32x128xbf16>
    %cst_43 = arith.constant dense<0.000000e+00> : vector<24x128xf32>
    %140 = tpu.matmul %138, %139, %cst_43 {dimension_numbers = #tpu.dot_dimension_numbers<[1], [0], [0], [1], [0, 0, 1, 1], [], []>} : vector<24x32xbf16>, vector<32x128xbf16>, vector<24x128xf32> -> vector<24x128xf32>
    %141 = arith.addf %114, %140 : vector<24x128xf32>
    %c0_44 = arith.constant 0 : index
    %c0_45 = arith.constant 0 : index
    %142 = vector.load %arg6[%c0_44, %c0_45] : memref<1x128xf32, #tpu.memory_space<vmem>>, vector<1x128xf32>
    %143 = vector.broadcast %142 : vector<1x128xf32> to vector<24x128xf32>
    %144 = arith.addf %141, %143 : vector<24x128xf32>
    %145 = arith.addf %144, %1 : vector<24x128xf32>
    %c0_46 = arith.constant 0 : index
    %c0_47 = arith.constant 0 : index
    %146 = vector.load %arg7[%c0_46, %c0_47] : memref<1x128xf32, #tpu.memory_space<vmem>>, vector<1x128xf32>
    %c0_48 = arith.constant 0 : index
    %c0_49 = arith.constant 0 : index
    %147 = vector.load %arg8[%c0_48, %c0_49] : memref<1x128xf32, #tpu.memory_space<vmem>>, vector<1x128xf32>
    %cst_50 = arith.constant dense<0.000000e+00> : vector<24xf32>
    %148 = vector.multi_reduction <add>, %145, %cst_50 [1] : vector<24x128xf32> to vector<24xf32>
    %149 = vector.shape_cast %148 : vector<24xf32> to vector<24x1xf32>
    %cst_51 = arith.constant 1.280000e+02 : f32
    %150 = vector.broadcast %cst_51 : f32 to vector<24x1xf32>
    %151 = arith.divf %149, %150 : vector<24x1xf32>
    %152 = vector.broadcast %151 : vector<24x1xf32> to vector<24x128xf32>
    %153 = arith.subf %145, %152 : vector<24x128xf32>
    %154 = arith.mulf %153, %153 : vector<24x128xf32>
    %cst_52 = arith.constant dense<0.000000e+00> : vector<24xf32>
    %155 = vector.multi_reduction <add>, %154, %cst_52 [1] : vector<24x128xf32> to vector<24xf32>
    %156 = vector.shape_cast %155 : vector<24xf32> to vector<24x1xf32>
    %cst_53 = arith.constant 1.280000e+02 : f32
    %157 = vector.broadcast %cst_53 : f32 to vector<24x1xf32>
    %158 = arith.divf %156, %157 : vector<24x1xf32>
    %159 = vector.broadcast %151 : vector<24x1xf32> to vector<24x128xf32>
    %160 = arith.subf %145, %159 : vector<24x128xf32>
    %cst_54 = arith.constant 9.99999974E-6 : f32
    %161 = vector.broadcast %cst_54 : f32 to vector<24x1xf32>
    %162 = arith.addf %158, %161 : vector<24x1xf32>
    %163 = math.rsqrt %162 : vector<24x1xf32>
    %164 = vector.broadcast %163 : vector<24x1xf32> to vector<24x128xf32>
    %165 = arith.mulf %160, %164 : vector<24x128xf32>
    %166 = vector.broadcast %146 : vector<1x128xf32> to vector<24x128xf32>
    %167 = arith.mulf %165, %166 : vector<24x128xf32>
    %168 = vector.broadcast %147 : vector<1x128xf32> to vector<24x128xf32>
    %169 = arith.addf %167, %168 : vector<24x128xf32>
    %c0_55 = arith.constant 0 : index
    %c0_56 = arith.constant 0 : index
    %170 = vector.load %arg9[%c0_55, %c0_56] : memref<128x256xbf16, #tpu.memory_space<vmem>>, vector<128x256xbf16>
    %171 = arith.truncf %169 : vector<24x128xf32> to vector<24x128xbf16>
    %cst_57 = arith.constant dense<0.000000e+00> : vector<24x256xf32>
    %172 = tpu.matmul %171, %170, %cst_57 {dimension_numbers = #tpu.dot_dimension_numbers<[1], [0], [0], [1], [0, 0, 1, 1], [], []>} : vector<24x128xbf16>, vector<128x256xbf16>, vector<24x256xf32> -> vector<24x256xf32>
    %c0_58 = arith.constant 0 : index
    %c0_59 = arith.constant 0 : index
    %173 = vector.load %arg10[%c0_58, %c0_59] : memref<1x256xf32, #tpu.memory_space<vmem>>, vector<1x256xf32>
    %174 = vector.broadcast %173 : vector<1x256xf32> to vector<24x256xf32>
    %175 = arith.addf %172, %174 : vector<24x256xf32>
    %cst_60 = arith.constant 5.000000e-01 : f32
    %176 = vector.broadcast %cst_60 : f32 to vector<24x256xf32>
    %177 = arith.mulf %176, %175 : vector<24x256xf32>
    %cst_61 = arith.constant 0.707106769 : f32
    %178 = vector.broadcast %cst_61 : f32 to vector<24x256xf32>
    %179 = arith.mulf %175, %178 : vector<24x256xf32>
    %180 = math.erf %179 : vector<24x256xf32>
    %cst_62 = arith.constant 1.000000e+00 : f32
    %181 = vector.broadcast %cst_62 : f32 to vector<24x256xf32>
    %182 = arith.addf %181, %180 : vector<24x256xf32>
    %183 = arith.mulf %177, %182 : vector<24x256xf32>
    %c0_63 = arith.constant 0 : index
    %c0_64 = arith.constant 0 : index
    %184 = vector.load %arg11[%c0_63, %c0_64] : memref<256x128xbf16, #tpu.memory_space<vmem>>, vector<256x128xbf16>
    %185 = arith.truncf %183 : vector<24x256xf32> to vector<24x256xbf16>
    %cst_65 = arith.constant dense<0.000000e+00> : vector<24x128xf32>
    %186 = tpu.matmul %185, %184, %cst_65 {dimension_numbers = #tpu.dot_dimension_numbers<[1], [0], [0], [1], [0, 0, 1, 1], [], []>} : vector<24x256xbf16>, vector<256x128xbf16>, vector<24x128xf32> -> vector<24x128xf32>
    %c0_66 = arith.constant 0 : index
    %c0_67 = arith.constant 0 : index
    %187 = vector.load %arg12[%c0_66, %c0_67] : memref<1x128xf32, #tpu.memory_space<vmem>>, vector<1x128xf32>
    %188 = vector.broadcast %187 : vector<1x128xf32> to vector<24x128xf32>
    %189 = arith.addf %186, %188 : vector<24x128xf32>
    %190 = arith.addf %189, %145 : vector<24x128xf32>
    %c0_68 = arith.constant 0 : index
    %c0_69 = arith.constant 0 : index
    %c0_70 = arith.constant 0 : index
    %191 = vector.load %arg13[%c0_68, %c0_69, %c0_70] : memref<1x24x128xf32, #tpu.memory_space<vmem>>, vector<1x24x128xf32>
    %192 = vector.shape_cast %191 : vector<1x24x128xf32> to vector<24x128xf32>
    %193 = vector.shape_cast %190 : vector<24x128xf32> to vector<1x24x128xf32>
    tpu.vector_store %arg13[%c0_68, %c0_69, %c0_70], %193 {strides = array<i32>} : memref<1x24x128xf32, #tpu.memory_space<vmem>>, vector<1x24x128xf32>,
    return
  }
  func.func @transform_0(%arg0: i32) -> (i32, i32, i32) {
    %c0_i32 = arith.constant 0 : i32
    %c0_i32_0 = arith.constant 0 : i32
    %c0_i32_1 = arith.constant 0 : i32
    return %arg0, %c0_i32, %c0_i32_0 : i32, i32, i32
  }
  func.func @transform_1(%arg0: i32) -> (i32, i32) {
    %c0_i32 = arith.constant 0 : i32
    %c0_i32_0 = arith.constant 0 : i32
    %c0_i32_1 = arith.constant 0 : i32
    return %c0_i32, %c0_i32_0 : i32, i32
  }
  func.func @transform_2(%arg0: i32) -> (i32, i32) {
    %c0_i32 = arith.constant 0 : i32
    %c0_i32_0 = arith.constant 0 : i32
    %c0_i32_1 = arith.constant 0 : i32
    return %c0_i32, %c0_i32_0 : i32, i32
  }
  func.func @transform_3(%arg0: i32) -> (i32, i32) {
    %c0_i32 = arith.constant 0 : i32
    %c0_i32_0 = arith.constant 0 : i32
    %c0_i32_1 = arith.constant 0 : i32
    return %c0_i32, %c0_i32_0 : i32, i32
  }
  func.func @transform_4(%arg0: i32) -> (i32, i32) {
    %c0_i32 = arith.constant 0 : i32
    %c0_i32_0 = arith.constant 0 : i32
    %c0_i32_1 = arith.constant 0 : i32
    return %c0_i32, %c0_i32_0 : i32, i32
  }
  func.func @transform_5(%arg0: i32) -> (i32, i32) {
    %c0_i32 = arith.constant 0 : i32
    %c0_i32_0 = arith.constant 0 : i32
    %c0_i32_1 = arith.constant 0 : i32
    return %c0_i32, %c0_i32_0 : i32, i32
  }
  func.func @transform_6(%arg0: i32) -> (i32, i32) {
    %c0_i32 = arith.constant 0 : i32
    %c0_i32_0 = arith.constant 0 : i32
    %c0_i32_1 = arith.constant 0 : i32
    return %c0_i32, %c0_i32_0 : i32, i32
  }
  func.func @transform_7(%arg0: i32) -> (i32, i32) {
    %c0_i32 = arith.constant 0 : i32
    %c0_i32_0 = arith.constant 0 : i32
    %c0_i32_1 = arith.constant 0 : i32
    return %c0_i32, %c0_i32_0 : i32, i32
  }
  func.func @transform_8(%arg0: i32) -> (i32, i32) {
    %c0_i32 = arith.constant 0 : i32
    %c0_i32_0 = arith.constant 0 : i32
    %c0_i32_1 = arith.constant 0 : i32
    return %c0_i32, %c0_i32_0 : i32, i32
  }
  func.func @transform_9(%arg0: i32) -> (i32, i32) {
    %c0_i32 = arith.constant 0 : i32
    %c0_i32_0 = arith.constant 0 : i32
    %c0_i32_1 = arith.constant 0 : i32
    return %c0_i32, %c0_i32_0 : i32, i32
  }
  func.func @transform_10(%arg0: i32) -> (i32, i32) {
    %c0_i32 = arith.constant 0 : i32
    %c0_i32_0 = arith.constant 0 : i32
    %c0_i32_1 = arith.constant 0 : i32
    return %c0_i32, %c0_i32_0 : i32, i32
  }
  func.func @transform_11(%arg0: i32) -> (i32, i32) {
    %c0_i32 = arith.constant 0 : i32
    %c0_i32_0 = arith.constant 0 : i32
    %c0_i32_1 = arith.constant 0 : i32
    return %c0_i32, %c0_i32_0 : i32, i32
  }
  func.func @transform_12(%arg0: i32) -> (i32, i32, i32) {
    %c0_i32 = arith.constant 0 : i32
    %c0_i32_0 = arith.constant 0 : i32
    %c0_i32_1 = arith.constant 0 : i32
    return %arg0, %c0_i32, %c0_i32_0 : i32, i32, i32
  }
}

module attributes {stable_mosaic.version = 11 : i64} {
  func.func @_patch_embed_kernel(%arg0: i32, %arg1: memref<1x16x768xf32, #tpu.memory_space<vmem>>, %arg2: memref<1x768xf32, #tpu.memory_space<vmem>>, %arg3: memref<1x768xf32, #tpu.memory_space<vmem>>, %arg4: memref<768x128xbf16, #tpu.memory_space<vmem>>, %arg5: memref<1x128xf32, #tpu.memory_space<vmem>>, %arg6: memref<1x128xf32, #tpu.memory_space<vmem>>, %arg7: memref<1x128xf32, #tpu.memory_space<vmem>>, %arg8: memref<1x16x128xf32, #tpu.memory_space<vmem>>) attributes {dimension_semantics = [#tpu.dimension_semantics<parallel>], iteration_bounds = array<i64: 2>, scalar_prefetch = 0 : i64, scratch_operands = 0 : i64, tpu.core_type = #tpu.core_type<tc>, window_params = [{transform_indices = @transform_0, window_bounds = array<i64: 1, 16, 768>}, {pipeline_mode = #tpu.pipeline_mode<synchronous>, transform_indices = @transform_1, window_bounds = array<i64: 1, 768>}, {pipeline_mode = #tpu.pipeline_mode<synchronous>, transform_indices = @transform_2, window_bounds = array<i64: 1, 768>}, {pipeline_mode = #tpu.pipeline_mode<synchronous>, transform_indices = @transform_3, window_bounds = array<i64: 768, 128>}, {pipeline_mode = #tpu.pipeline_mode<synchronous>, transform_indices = @transform_4, window_bounds = array<i64: 1, 128>}, {pipeline_mode = #tpu.pipeline_mode<synchronous>, transform_indices = @transform_5, window_bounds = array<i64: 1, 128>}, {pipeline_mode = #tpu.pipeline_mode<synchronous>, transform_indices = @transform_6, window_bounds = array<i64: 1, 128>}, {transform_indices = @transform_7, window_bounds = array<i64: 1, 16, 128>}]} {
    %c0 = arith.constant 0 : index
    %c0_0 = arith.constant 0 : index
    %c0_1 = arith.constant 0 : index
    %0 = vector.load %arg1[%c0, %c0_0, %c0_1] : memref<1x16x768xf32, #tpu.memory_space<vmem>>, vector<1x16x768xf32>
    %1 = vector.shape_cast %0 : vector<1x16x768xf32> to vector<16x768xf32>
    %c0_2 = arith.constant 0 : index
    %c0_3 = arith.constant 0 : index
    %2 = vector.load %arg2[%c0_2, %c0_3] : memref<1x768xf32, #tpu.memory_space<vmem>>, vector<1x768xf32>
    %c0_4 = arith.constant 0 : index
    %c0_5 = arith.constant 0 : index
    %3 = vector.load %arg3[%c0_4, %c0_5] : memref<1x768xf32, #tpu.memory_space<vmem>>, vector<1x768xf32>
    %cst = arith.constant dense<0.000000e+00> : vector<16xf32>
    %4 = vector.multi_reduction <add>, %1, %cst [1] : vector<16x768xf32> to vector<16xf32>
    %5 = vector.shape_cast %4 : vector<16xf32> to vector<16x1xf32>
    %cst_6 = arith.constant 7.680000e+02 : f32
    %6 = vector.broadcast %cst_6 : f32 to vector<16x1xf32>
    %7 = arith.divf %5, %6 : vector<16x1xf32>
    %8 = vector.broadcast %7 : vector<16x1xf32> to vector<16x768xf32>
    %9 = arith.subf %1, %8 : vector<16x768xf32>
    %10 = arith.mulf %9, %9 : vector<16x768xf32>
    %cst_7 = arith.constant dense<0.000000e+00> : vector<16xf32>
    %11 = vector.multi_reduction <add>, %10, %cst_7 [1] : vector<16x768xf32> to vector<16xf32>
    %12 = vector.shape_cast %11 : vector<16xf32> to vector<16x1xf32>
    %cst_8 = arith.constant 7.680000e+02 : f32
    %13 = vector.broadcast %cst_8 : f32 to vector<16x1xf32>
    %14 = arith.divf %12, %13 : vector<16x1xf32>
    %15 = vector.broadcast %7 : vector<16x1xf32> to vector<16x768xf32>
    %16 = arith.subf %1, %15 : vector<16x768xf32>
    %cst_9 = arith.constant 9.99999974E-6 : f32
    %17 = vector.broadcast %cst_9 : f32 to vector<16x1xf32>
    %18 = arith.addf %14, %17 : vector<16x1xf32>
    %19 = math.rsqrt %18 : vector<16x1xf32>
    %20 = vector.broadcast %19 : vector<16x1xf32> to vector<16x768xf32>
    %21 = arith.mulf %16, %20 : vector<16x768xf32>
    %22 = vector.broadcast %2 : vector<1x768xf32> to vector<16x768xf32>
    %23 = arith.mulf %21, %22 : vector<16x768xf32>
    %24 = vector.broadcast %3 : vector<1x768xf32> to vector<16x768xf32>
    %25 = arith.addf %23, %24 : vector<16x768xf32>
    %c0_10 = arith.constant 0 : index
    %c0_11 = arith.constant 0 : index
    %26 = vector.load %arg4[%c0_10, %c0_11] : memref<768x128xbf16, #tpu.memory_space<vmem>>, vector<768x128xbf16>
    %27 = arith.truncf %25 : vector<16x768xf32> to vector<16x768xbf16>
    %cst_12 = arith.constant dense<0.000000e+00> : vector<16x128xf32>
    %28 = tpu.matmul %27, %26, %cst_12 {dimension_numbers = #tpu.dot_dimension_numbers<[1], [0], [0], [1], [0, 0, 1, 1], [], []>} : vector<16x768xbf16>, vector<768x128xbf16>, vector<16x128xf32> -> vector<16x128xf32>
    %c0_13 = arith.constant 0 : index
    %c0_14 = arith.constant 0 : index
    %29 = vector.load %arg5[%c0_13, %c0_14] : memref<1x128xf32, #tpu.memory_space<vmem>>, vector<1x128xf32>
    %30 = vector.broadcast %29 : vector<1x128xf32> to vector<16x128xf32>
    %31 = arith.addf %28, %30 : vector<16x128xf32>
    %c0_15 = arith.constant 0 : index
    %c0_16 = arith.constant 0 : index
    %32 = vector.load %arg6[%c0_15, %c0_16] : memref<1x128xf32, #tpu.memory_space<vmem>>, vector<1x128xf32>
    %c0_17 = arith.constant 0 : index
    %c0_18 = arith.constant 0 : index
    %33 = vector.load %arg7[%c0_17, %c0_18] : memref<1x128xf32, #tpu.memory_space<vmem>>, vector<1x128xf32>
    %cst_19 = arith.constant dense<0.000000e+00> : vector<16xf32>
    %34 = vector.multi_reduction <add>, %31, %cst_19 [1] : vector<16x128xf32> to vector<16xf32>
    %35 = vector.shape_cast %34 : vector<16xf32> to vector<16x1xf32>
    %cst_20 = arith.constant 1.280000e+02 : f32
    %36 = vector.broadcast %cst_20 : f32 to vector<16x1xf32>
    %37 = arith.divf %35, %36 : vector<16x1xf32>
    %38 = vector.broadcast %37 : vector<16x1xf32> to vector<16x128xf32>
    %39 = arith.subf %31, %38 : vector<16x128xf32>
    %40 = arith.mulf %39, %39 : vector<16x128xf32>
    %cst_21 = arith.constant dense<0.000000e+00> : vector<16xf32>
    %41 = vector.multi_reduction <add>, %40, %cst_21 [1] : vector<16x128xf32> to vector<16xf32>
    %42 = vector.shape_cast %41 : vector<16xf32> to vector<16x1xf32>
    %cst_22 = arith.constant 1.280000e+02 : f32
    %43 = vector.broadcast %cst_22 : f32 to vector<16x1xf32>
    %44 = arith.divf %42, %43 : vector<16x1xf32>
    %45 = vector.broadcast %37 : vector<16x1xf32> to vector<16x128xf32>
    %46 = arith.subf %31, %45 : vector<16x128xf32>
    %cst_23 = arith.constant 9.99999974E-6 : f32
    %47 = vector.broadcast %cst_23 : f32 to vector<16x1xf32>
    %48 = arith.addf %44, %47 : vector<16x1xf32>
    %49 = math.rsqrt %48 : vector<16x1xf32>
    %50 = vector.broadcast %49 : vector<16x1xf32> to vector<16x128xf32>
    %51 = arith.mulf %46, %50 : vector<16x128xf32>
    %52 = vector.broadcast %32 : vector<1x128xf32> to vector<16x128xf32>
    %53 = arith.mulf %51, %52 : vector<16x128xf32>
    %54 = vector.broadcast %33 : vector<1x128xf32> to vector<16x128xf32>
    %55 = arith.addf %53, %54 : vector<16x128xf32>
    %c0_24 = arith.constant 0 : index
    %c0_25 = arith.constant 0 : index
    %c0_26 = arith.constant 0 : index
    %56 = vector.load %arg8[%c0_24, %c0_25, %c0_26] : memref<1x16x128xf32, #tpu.memory_space<vmem>>, vector<1x16x128xf32>
    %57 = vector.shape_cast %56 : vector<1x16x128xf32> to vector<16x128xf32>
    %58 = vector.shape_cast %55 : vector<16x128xf32> to vector<1x16x128xf32>
    tpu.vector_store %arg8[%c0_24, %c0_25, %c0_26], %58 {strides = array<i32>} : memref<1x16x128xf32, #tpu.memory_space<vmem>>, vector<1x16x128xf32>,
    return
  }
  func.func @transform_0(%arg0: i32) -> (i32, i32, i32) {
    %c0_i32 = arith.constant 0 : i32
    %c0_i32_0 = arith.constant 0 : i32
    %c0_i32_1 = arith.constant 0 : i32
    return %arg0, %c0_i32, %c0_i32_0 : i32, i32, i32
  }
  func.func @transform_1(%arg0: i32) -> (i32, i32) {
    %c0_i32 = arith.constant 0 : i32
    %c0_i32_0 = arith.constant 0 : i32
    %c0_i32_1 = arith.constant 0 : i32
    return %c0_i32, %c0_i32_0 : i32, i32
  }
  func.func @transform_2(%arg0: i32) -> (i32, i32) {
    %c0_i32 = arith.constant 0 : i32
    %c0_i32_0 = arith.constant 0 : i32
    %c0_i32_1 = arith.constant 0 : i32
    return %c0_i32, %c0_i32_0 : i32, i32
  }
  func.func @transform_3(%arg0: i32) -> (i32, i32) {
    %c0_i32 = arith.constant 0 : i32
    %c0_i32_0 = arith.constant 0 : i32
    %c0_i32_1 = arith.constant 0 : i32
    return %c0_i32, %c0_i32_0 : i32, i32
  }
  func.func @transform_4(%arg0: i32) -> (i32, i32) {
    %c0_i32 = arith.constant 0 : i32
    %c0_i32_0 = arith.constant 0 : i32
    %c0_i32_1 = arith.constant 0 : i32
    return %c0_i32, %c0_i32_0 : i32, i32
  }
  func.func @transform_5(%arg0: i32) -> (i32, i32) {
    %c0_i32 = arith.constant 0 : i32
    %c0_i32_0 = arith.constant 0 : i32
    %c0_i32_1 = arith.constant 0 : i32
    return %c0_i32, %c0_i32_0 : i32, i32
  }
  func.func @transform_6(%arg0: i32) -> (i32, i32) {
    %c0_i32 = arith.constant 0 : i32
    %c0_i32_0 = arith.constant 0 : i32
    %c0_i32_1 = arith.constant 0 : i32
    return %c0_i32, %c0_i32_0 : i32, i32
  }
  func.func @transform_7(%arg0: i32) -> (i32, i32, i32) {
    %c0_i32 = arith.constant 0 : i32
    %c0_i32_0 = arith.constant 0 : i32
    %c0_i32_1 = arith.constant 0 : i32
    return %arg0, %c0_i32, %c0_i32_0 : i32, i32, i32
  }
}

module attributes {stable_mosaic.version = 11 : i64} {
  func.func @_head_kernel(%arg0: i32, %arg1: memref<2x128xf32, #tpu.memory_space<vmem>>, %arg2: memref<1x128xf32, #tpu.memory_space<vmem>>, %arg3: memref<1x128xf32, #tpu.memory_space<vmem>>, %arg4: memref<128x10xbf16, #tpu.memory_space<vmem>>, %arg5: memref<1x10xf32, #tpu.memory_space<vmem>>, %arg6: memref<2x10xf32, #tpu.memory_space<vmem>>) attributes {dimension_semantics = [#tpu.dimension_semantics<arbitrary>], iteration_bounds = array<i64: 1>, scalar_prefetch = 0 : i64, scratch_operands = 0 : i64, tpu.core_type = #tpu.core_type<tc>, window_params = [{pipeline_mode = #tpu.pipeline_mode<synchronous>, transform_indices = @transform_0, window_bounds = array<i64: 2, 128>}, {pipeline_mode = #tpu.pipeline_mode<synchronous>, transform_indices = @transform_1, window_bounds = array<i64: 1, 128>}, {pipeline_mode = #tpu.pipeline_mode<synchronous>, transform_indices = @transform_2, window_bounds = array<i64: 1, 128>}, {pipeline_mode = #tpu.pipeline_mode<synchronous>, transform_indices = @transform_3, window_bounds = array<i64: 128, 10>}, {pipeline_mode = #tpu.pipeline_mode<synchronous>, transform_indices = @transform_4, window_bounds = array<i64: 1, 10>}, {pipeline_mode = #tpu.pipeline_mode<synchronous>, transform_indices = @transform_5, window_bounds = array<i64: 2, 10>}]} {
    %c0 = arith.constant 0 : index
    %c0_0 = arith.constant 0 : index
    %0 = vector.load %arg1[%c0, %c0_0] : memref<2x128xf32, #tpu.memory_space<vmem>>, vector<2x128xf32>
    %c0_1 = arith.constant 0 : index
    %c0_2 = arith.constant 0 : index
    %1 = vector.load %arg2[%c0_1, %c0_2] : memref<1x128xf32, #tpu.memory_space<vmem>>, vector<1x128xf32>
    %c0_3 = arith.constant 0 : index
    %c0_4 = arith.constant 0 : index
    %2 = vector.load %arg3[%c0_3, %c0_4] : memref<1x128xf32, #tpu.memory_space<vmem>>, vector<1x128xf32>
    %cst = arith.constant dense<0.000000e+00> : vector<2xf32>
    %3 = vector.multi_reduction <add>, %0, %cst [1] : vector<2x128xf32> to vector<2xf32>
    %4 = vector.shape_cast %3 : vector<2xf32> to vector<2x1xf32>
    %cst_5 = arith.constant 1.280000e+02 : f32
    %5 = vector.broadcast %cst_5 : f32 to vector<2x1xf32>
    %6 = arith.divf %4, %5 : vector<2x1xf32>
    %7 = vector.broadcast %6 : vector<2x1xf32> to vector<2x128xf32>
    %8 = arith.subf %0, %7 : vector<2x128xf32>
    %9 = arith.mulf %8, %8 : vector<2x128xf32>
    %cst_6 = arith.constant dense<0.000000e+00> : vector<2xf32>
    %10 = vector.multi_reduction <add>, %9, %cst_6 [1] : vector<2x128xf32> to vector<2xf32>
    %11 = vector.shape_cast %10 : vector<2xf32> to vector<2x1xf32>
    %cst_7 = arith.constant 1.280000e+02 : f32
    %12 = vector.broadcast %cst_7 : f32 to vector<2x1xf32>
    %13 = arith.divf %11, %12 : vector<2x1xf32>
    %14 = vector.broadcast %6 : vector<2x1xf32> to vector<2x128xf32>
    %15 = arith.subf %0, %14 : vector<2x128xf32>
    %cst_8 = arith.constant 9.99999974E-6 : f32
    %16 = vector.broadcast %cst_8 : f32 to vector<2x1xf32>
    %17 = arith.addf %13, %16 : vector<2x1xf32>
    %18 = math.rsqrt %17 : vector<2x1xf32>
    %19 = vector.broadcast %18 : vector<2x1xf32> to vector<2x128xf32>
    %20 = arith.mulf %15, %19 : vector<2x128xf32>
    %21 = vector.broadcast %1 : vector<1x128xf32> to vector<2x128xf32>
    %22 = arith.mulf %20, %21 : vector<2x128xf32>
    %23 = vector.broadcast %2 : vector<1x128xf32> to vector<2x128xf32>
    %24 = arith.addf %22, %23 : vector<2x128xf32>
    %c0_9 = arith.constant 0 : index
    %c0_10 = arith.constant 0 : index
    %25 = vector.load %arg4[%c0_9, %c0_10] : memref<128x10xbf16, #tpu.memory_space<vmem>>, vector<128x10xbf16>
    %26 = arith.truncf %24 : vector<2x128xf32> to vector<2x128xbf16>
    %cst_11 = arith.constant dense<0.000000e+00> : vector<2x10xf32>
    %27 = tpu.matmul %26, %25, %cst_11 {dimension_numbers = #tpu.dot_dimension_numbers<[1], [0], [0], [1], [0, 0, 1, 1], [], []>} : vector<2x128xbf16>, vector<128x10xbf16>, vector<2x10xf32> -> vector<2x10xf32>
    %c0_12 = arith.constant 0 : index
    %c0_13 = arith.constant 0 : index
    %28 = vector.load %arg5[%c0_12, %c0_13] : memref<1x10xf32, #tpu.memory_space<vmem>>, vector<1x10xf32>
    %29 = vector.broadcast %28 : vector<1x10xf32> to vector<2x10xf32>
    %30 = arith.addf %27, %29 : vector<2x10xf32>
    %c0_14 = arith.constant 0 : index
    %c0_15 = arith.constant 0 : index
    %31 = vector.load %arg6[%c0_14, %c0_15] : memref<2x10xf32, #tpu.memory_space<vmem>>, vector<2x10xf32>
    tpu.vector_store %arg6[%c0_14, %c0_15], %30 {strides = array<i32>} : memref<2x10xf32, #tpu.memory_space<vmem>>, vector<2x10xf32>,
    return
  }
  func.func @transform_0(%arg0: i32) -> (i32, i32) {
    %c0_i32 = arith.constant 0 : i32
    %c0_i32_0 = arith.constant 0 : i32
    %c0_i32_1 = arith.constant 0 : i32
    return %c0_i32, %c0_i32_0 : i32, i32
  }
  func.func @transform_1(%arg0: i32) -> (i32, i32) {
    %c0_i32 = arith.constant 0 : i32
    %c0_i32_0 = arith.constant 0 : i32
    %c0_i32_1 = arith.constant 0 : i32
    return %c0_i32, %c0_i32_0 : i32, i32
  }
  func.func @transform_2(%arg0: i32) -> (i32, i32) {
    %c0_i32 = arith.constant 0 : i32
    %c0_i32_0 = arith.constant 0 : i32
    %c0_i32_1 = arith.constant 0 : i32
    return %c0_i32, %c0_i32_0 : i32, i32
  }
  func.func @transform_3(%arg0: i32) -> (i32, i32) {
    %c0_i32 = arith.constant 0 : i32
    %c0_i32_0 = arith.constant 0 : i32
    %c0_i32_1 = arith.constant 0 : i32
    return %c0_i32, %c0_i32_0 : i32, i32
  }
  func.func @transform_4(%arg0: i32) -> (i32, i32) {
    %c0_i32 = arith.constant 0 : i32
    %c0_i32_0 = arith.constant 0 : i32
    %c0_i32_1 = arith.constant 0 : i32
    return %c0_i32, %c0_i32_0 : i32, i32
  }
  func.func @transform_5(%arg0: i32) -> (i32, i32) {
    %c0_i32 = arith.constant 0 : i32
    %c0_i32_0 = arith.constant 0 : i32
    %c0_i32_1 = arith.constant 0 : i32
    return %c0_i32, %c0_i32_0 : i32, i32
  }
}

</mosaic_0001>

<bundles_post_ra>
// kernel: _lambda_.4
= control target key start
LH: loop header
LB: loop body
LE: loop exit
PB: predicated region body
PF: predicated region fallthrough
CT: control target
= control target key end

     0   :  { %s1312_s24 = smov 0   ;;  %s1592_s0 = inlined_call_operand.vmem [shape: f32[2,16,768], index: 0, kind: input, shape index: {}]   ;;  %s1593_s1 = inlined_call_operand.vmem [shape: f32[1,768], index: 1, kind: input, shape index: {}]   ;;  %s1594_s2 = inlined_call_operand.vmem [shape: f32[1,768], index: 2, kind: input, shape index: {}]   ;;  %s1595_s3 = inlined_call_operand.vmem [shape: bf16[768,128], index: 3, kind: input, shape index: {}]   ;;  %s1596_s4 = inlined_call_operand.vmem [shape: f32[1,128], index: 4, kind: input, shape index: {}]   ;;  %s1597_s5 = inlined_call_operand.vmem [shape: f32[1,128], index: 5, kind: input, shape index: {}]   ;;  %s1598_s6 = inlined_call_operand.vmem [shape: f32[1,128], index: 6, kind: input, shape index: {}]   ;;  %s1599_s7 = inlined_call_operand.vmem [shape: f32[2,16,128], index: 7, kind: output, shape index: {}]  }
   0x1 LB: > { %s1071_s25 = sadd.s32 4294967295, %s1270_s24   ;;  %p1075_p0 = scmp.ge.s32.totalorder %s1270_s24, 1  ;;  %s1270_s24 = sphi %s1312_s24, %s17_s24  }
   0x2   : > { %p237_p1 = scmp.lt.s32.totalorder %s1270_s24, 3 }
   0x4   : > { %p238_p2 = pnand %p1075_p0, %p237_p1 }
   0x5   : > { %p269_p3 = scmp.lt.s32.totalorder (!%p238_p2), %s1071_s25, 1  ;;  %v1208_v22 = vld [vmem:[%s1595_s3 + $0x40] sm:$0xff] (!%p238_p2)   ;;  %v1212_v26 = vld [vmem:[%s1595_s3 + $0x48] sm:$0xff] (!%p238_p2)  }
   0x6   : > { %241 = sbr.rel (%p238_p2) target bundleno = 919 (0x397), region = 48  ;;  %v1209_v23 = vld [vmem:[%s1595_s3] sm:$0xff] (!%p238_p2)   ;;  %1133 = vmatprep.subr.bf16.mxu0 (!%p238_p2), %v1208_v22  ;;  %v1233_v22 = vld [vmem:[%s1595_s3 + $0x30] sm:$0xff] (!%p238_p2)  }
   0x7   : > { %v1210_v24 = vld [vmem:[%s1595_s3 + $0xc0] sm:$0xff] (!%p238_p2)   ;;  %1134 = vmatpush3.bf16.msra.mxu0 (!%p238_p2), %v1209_v23  ;;  %v1235_v23 = vld [vmem:[%s1595_s3 + $0xb0] sm:$0xff] (!%p238_p2)  }
   0x8   : > { %v1211_v25 = vld [vmem:[%s1595_s3 + $0x80] sm:$0xff] (!%p238_p2)   ;;  %1155 = vmatprep.subr.bf16.mxu1 (!%p238_p2), %v1210_v24  ;;  %1135 = vmatprep.subr.bf16.mxu0 (!%p238_p2), %v1212_v26  ;;  %v1236_v24 = vld [vmem:[%s1595_s3 + $0x78] sm:$0xff] (!%p238_p2)  }
   0x9   : > { %1156 = vmatpush3.bf16.msra.mxu1 (!%p238_p2), %v1211_v25  ;;  %v1238_v25 = vld [vmem:[%s1595_s3 + $0xf8] sm:$0xff] (!%p238_p2)  }
   0xa   : > { %v1237_v26 = vld [vmem:[%s1595_s3 + $0x38] sm:$0xff] (!%p238_p2)  }
   0xd   : > { %s1601_s25 = smov (!%p269_p3, %s1071_s25), 1 }
   0xe   : > { %s1199_s26 = smul.u32 96, %s1601_s25 }
  0x10   : > { %s273_s29 = scalar_lea.vmem %s1592_s0, %s1199_s26 }
  0x11   : > { %v280_v0 = vld [vmem:[%s273_s29] sm:$0xff]  ;;  %v281_v1 = vld [vmem:[%s273_s29 + $0x8] sm:$0xff]  ;;  %v282_v2 = vld [vmem:[%s273_s29 + $0x10] sm:$0xff] }
  0x12   : > { %v283_v3 = vld [vmem:[%s273_s29 + $0x18] sm:$0xff]  ;;  %v294_v4 = vadd.f32 %v281_v1, %v280_v0  ;;  %v286_v5 = vld [vmem:[%s273_s29 + $0x30] sm:$0xff]  ;;  %v288_v7 = vld [vmem:[%s273_s29 + $0x40] sm:$0xff] }
  0x13   : > { %v287_v6 = vld [vmem:[%s273_s29 + $0x38] sm:$0xff]  ;;  %v284_v8 = vld [vmem:[%s273_s29 + $0x20] sm:$0xff]  ;;  %v289_v10 = vld [vmem:[%s273_s29 + $0x48] sm:$0xff] }
  0x14   : > { %v295_v9 = vadd.f32 %v294_v4, %v282_v2  ;;  %v301_v11 = vadd.f32 %v287_v6, %v286_v5  ;;  %v285_v12 = vld [vmem:[%s273_s29 + $0x28] sm:$0xff]  ;;  %v290_v13 = vld [vmem:[%s273_s29 + $0x50] sm:$0xff]  ;;  %v291_v16 = vld [vmem:[%s273_s29 + $0x58] sm:$0xff]  ;;  %s1132_s29 = sshll.u32 %s1601_s25, 4 }
  0x15   : > { %v1216_v4 = vld [vmem:[%s1595_s3 + $0x50] sm:$0xff]   ;;  %s278_s11 = scalar_lea.vmem %s1599_s7, %s1132_s29 }
  0x16   : > { %v296_v14 = vadd.f32 %v295_v9, %v283_v3  ;;  %v302_v15 = vadd.f32 %v301_v11, %v288_v7  ;;  %v1221_v9 = vld [vmem:[%s1595_s3 + $0x18] sm:$0xff]  }
  0x17   : > { %v1223_v11 = vld [vmem:[%s1595_s3 + $0x98] sm:$0xff]  }
  0x18   : > { %v297_v17 = vadd.f32 %v296_v14, %v284_v8  ;;  %v303_v18 = vadd.f32 %v302_v15, %v289_v10  ;;  %v1226_v14 = vld [vmem:[%s1595_s3 + $0xe0] sm:$0xff]  }
  0x19   : > { %v1227_v15 = vld [vmem:[%s1595_s3 + $0xa0] sm:$0xff]  }
  0x1a   : > { %v298_v19 = vadd.f32 %v297_v17, %v285_v12  ;;  %v304_v20 = vadd.f32 %v303_v18, %v290_v13  ;;  %v1230_v17 = vld [vmem:[%s1595_s3 + $0xe8] sm:$0xff]  }
  0x1b   : > { %v1229_v18 = vld [vmem:[%s1595_s3 + $0x28] sm:$0xff]  }
  0x1c   : > { %299 = vadd.xlane.f32.xlu0 %v298_v19  ;;  %v305_v21 = vadd.f32 %v304_v20, %v291_v16  ;;  %v1231_v19 = vld [vmem:[%s1595_s3 + $0xa8] sm:$0xff]   ;;  %v1232_v20 = vld [vmem:[%s1595_s3 + $0x70] sm:$0xff]  }
  0x20   : > { %306 = vadd.xlane.f32.xlu0 %v305_v21  ;;  %v1234_v21 = vld [vmem:[%s1595_s3 + $0xf0] sm:$0xff]  }
  0xa9   : > { %v300_v27 = vpop.xlane.xlu0 %299 }
  0xaa   : > { %v309_v28 = vmul.f32 0.0013020834, %v300_v27  ;;  %v1239_v27 = vld [vmem:[%s1595_s3 + $0xb8] sm:$0xff]  }
  0xac   : > { %v1341_v29 = vsub.f32 %v280_v0, %v309_v28  ;;  %v1343_v30 = vsub.f32 %v281_v1, %v309_v28  ;;  %v1345_v31 = vsub.f32 %v282_v2, %v309_v28  ;;  %v1347_v33 = vsub.f32 %v283_v3, %v309_v28  ;;  %v1213_v1 = vld [vmem:[%s1595_s3 + $0x8] sm:$0xff]  }
  0xad   : > { %v307_v32 = vpop.xlane.xlu0 %306  ;;  %v1353_v37 = vsub.f32 %v284_v8, %v309_v28  ;;  %v1363_v43 = vsub.f32 %v285_v12, %v309_v28  ;;  %v1214_v2 = vld [vmem:[%s1595_s3 + $0xc8] sm:$0xff]   ;;  %1136 = vmatpush3.bf16.msra.mxu0 %v1213_v1  ;;  %v1220_v8 = vld [vmem:[%s1595_s3 + $0x58] sm:$0xff]   ;;  %v1224_v12 = vld [vmem:[%s1595_s3 + $0x60] sm:$0xff]  }
  0xae   : > { %v310_v34 = vmul.f32 0.0013020834, %v307_v32  ;;  %v323_v35 = vmul.f32 %v1341_v29, %v1341_v29  ;;  %v324_v36 = vmul.f32 %v1343_v30, %v1343_v30  ;;  %v325_v38 = vmul.f32 %v1345_v31, %v1345_v31  ;;  %v1215_v3 = vld [vmem:[%s1595_s3 + $0x88] sm:$0xff]   ;;  %1157 = vmatprep.subr.bf16.mxu1 %v1214_v2  ;;  %1137 = vmatprep.subr.bf16.mxu0 %v1216_v4  ;;  %v1240_v28 = vld [vmem:[%s1595_s3 + $0x140] sm:$0xff]  }
  0xaf   : > { %v326_v44 = vmul.f32 %v1347_v33, %v1347_v33  ;;  %v327_v49 = vmul.f32 %v1353_v37, %v1353_v37  ;;  %v328_v54 = vmul.f32 %v1363_v43, %v1363_v43  ;;  %1158 = vmatpush3.bf16.msra.mxu1 %v1215_v3 }
  0xb0   : > { %v335_v39 = vadd.f32 %v324_v36, %v323_v35  ;;  %v1357_v40 = vsub.f32 %v286_v5, %v310_v34  ;;  %v1359_v41 = vsub.f32 %v287_v6, %v310_v34  ;;  %v1361_v42 = vsub.f32 %v288_v7, %v310_v34  ;;  %v1217_v5 = vld [vmem:[%s1595_s3 + $0x10] sm:$0xff]  }
  0xb1   : > { %v1367_v46 = vsub.f32 %v289_v10, %v310_v34  ;;  %v1375_v51 = vsub.f32 %v290_v13, %v310_v34  ;;  %v1381_v56 = vsub.f32 %v291_v16, %v310_v34  ;;  %v1218_v6 = vld [vmem:[%s1595_s3 + $0xd0] sm:$0xff]   ;;  %1138 = vmatpush3.bf16.msra.mxu0 %v1217_v5  ;;  %v1222_v10 = vld [vmem:[%s1595_s3 + $0xd8] sm:$0xff]   ;;  %v1225_v13 = vld [vmem:[%s1595_s3 + $0x20] sm:$0xff]   ;;  %v368_v36 = vlaneseq }
  0xb2   : > { %v336_v45 = vadd.f32 %v335_v39, %v325_v38  ;;  %v329_v47 = vmul.f32 %v1357_v40, %v1357_v40  ;;  %v330_v48 = vmul.f32 %v1359_v41, %v1359_v41  ;;  %v331_v52 = vmul.f32 %v1361_v42, %v1361_v42  ;;  %v1219_v7 = vld [vmem:[%s1595_s3 + $0x90] sm:$0xff]   ;;  %1159 = vmatprep.subr.bf16.mxu1 %v1218_v6  ;;  %v1228_v16 = vld [vmem:[%s1595_s3 + $0x68] sm:$0xff]  }
  0xb3   : > { %v332_v57 = vmul.f32 %v1367_v46, %v1367_v46  ;;  %v333_v60 = vmul.f32 %v1375_v51, %v1375_v51  ;;  %v334_v62 = vmul.f32 %v1381_v56, %v1381_v56  ;;  %1160 = vmatpush3.bf16.msra.mxu1 %v1219_v7  ;;  %1139 = vmatprep.subr.bf16.mxu0 %v1220_v8 }
  0xb4   : > { %v337_v50 = vadd.f32 %v336_v45, %v326_v44  ;;  %v342_v53 = vadd.f32 %v330_v48, %v329_v47  ;;  %1161 = vmatprep.subr.bf16.mxu1 %v1222_v10  ;;  %v1473_v45 = vshrl.u32 %v368_v36, 7  ;;  %v1479_v48 = vld [vmem:[%s1593_s1] sm:$0x3f]  ;;  %v1244_v36 = vld [vmem:[%s1595_s3 + $0x150] sm:$0xff]  }
  0xb5   : > { %1140 = vmatpush3.bf16.msra.mxu0 %v1221_v9 }
  0xb6   : > { %v338_v55 = vadd.f32 %v337_v50, %v327_v49  ;;  %v343_v58 = vadd.f32 %v342_v53, %v331_v52  ;;  %1141 = vmatprep.subr.bf16.mxu0 %v1224_v12  ;;  %v374_v47 = vsub.s32 1, %v1473_v45  ;;  %v382_v49 = vsub.s32 3, %v1473_v45 }
  0xb7   : > { %1162 = vmatpush3.bf16.msra.mxu1 %v1223_v11  ;;  %v370_v50 = vsub.s32 0, %v1473_v45  ;;  %v378_v52 = vsub.s32 2, %v1473_v45  ;;  %v390_v53 = vsub.s32 5, %v1473_v45 }
  0xb8   : > { %v339_v59 = vadd.f32 %v338_v55, %v328_v54  ;;  %v344_v61 = vadd.f32 %v343_v58, %v332_v57  ;;  %1163 = vmatprep.subr.bf16.mxu1 %v1226_v14  ;;  %v1490_v55 = vld [vmem:[%s1594_s2] sm:$0x3f]  ;;  %v375_v57 = vrot.slane %v1479_v48, %v374_v47 }
  0xb9   : > { %1142 = vmatpush3.bf16.msra.mxu0 %v1225_v13  ;;  %v418_v1 = vrot.slane %v1490_v55, %v374_v47  ;;  %v391_v2 = vrot.slane %v1479_v48, %v390_v53  ;;  %v426_v4 = vrot.slane %v1490_v55, %v382_v49  ;;  %v422_v5 = vrot.slane %v1490_v55, %v378_v52  ;;  %v1248_v47 = vld [vmem:[%s1595_s3 + $0x160] sm:$0xff]  }
  0xba   : > { %340 = vadd.xlane.f32.xlu1 %v339_v59  ;;  %v345_v63 = vadd.f32 %v344_v61, %v333_v60  ;;  %1143 = vmatprep.subr.bf16.mxu0 %v1228_v16  ;;  %v383_v60 = vrot.slane %v1479_v48, %v382_v49  ;;  %v1249_v49 = vld [vmem:[%s1595_s3 + $0x120] sm:$0xff]  }
  0xbb   : > { %1164 = vmatpush3.bf16.msra.mxu1 %v1227_v15 }
  0xbc   : > { %v346_v0 = vadd.f32 %v345_v63, %v334_v62  ;;  %1165 = vmatprep.subr.bf16.mxu1 %v1230_v17  ;;  %v371_v62 = vrot.slane %v1479_v48, %v370_v50 }
  0xbd   : > { %1144 = vmatpush3.bf16.msra.mxu0 %v1229_v18 }
  0xbe   : > { %347 = vadd.xlane.f32.xlu1 %v346_v0  ;;  %1145 = vmatprep.subr.bf16.mxu0 %v1232_v20  ;;  %v379_v0 = vrot.slane %v1479_v48, %v378_v52  ;;  %v386_v52 = vsub.s32 4, %v1473_v45  ;;  %v1253_v45 = vld [vmem:[%s1595_s3 + $0x130] sm:$0xff]  }
  0xbf   : > { %1166 = vmatpush3.bf16.msra.mxu1 %v1231_v19 }
  0xc0   : > { %1167 = vmatprep.subr.bf16.mxu1 %v1234_v21 }
  0xc1   : > { %1146 = vmatpush3.bf16.msra.mxu0 %v1233_v22 }
  0xc2   : > { %1147 = vmatprep.subr.bf16.mxu0 %v1236_v24 }
  0xc3   : > { %1168 = vmatpush3.bf16.msra.mxu1 %v1235_v23 }
  0xc4   : > { %1169 = vmatprep.subr.bf16.mxu1 %v1238_v25  ;;  %v1241_v25 = vld [vmem:[%s1595_s3 + $0x100] sm:$0xff]  }
  0xc5   : > { %1148 = vmatpush3.bf16.msra.mxu0 %v1237_v26 }
  0xc6   : > { %1177 = vmatprep.subr.bf16.mxu0 %v1240_v28 }
  0xc7   : > { %1170 = vmatpush3.bf16.msra.mxu1 %v1239_v27 }
 0x147   : > { %v341_v32 = vpop.xlane.xlu1 %340 }
 0x148   : > { %v349_v34 = vmul.f32 0.0013020834, %v341_v32  ;;  %v1242_v32 = vld [vmem:[%s1595_s3 + $0x148] sm:$0xff]  }
 0x14a   : > { %v351_v35 = vadd.f32 1e-05, %v349_v34 }
 0x14b   : > { %v348_v38 = vpop.xlane.xlu1 %347 }
 0x14c   : > { %1256 = vrsqrt.f32 %v351_v35  ;;  %v350_v39 = vmul.f32 0.0013020834, %v348_v38  ;;  %v1243_v35 = vld [vmem:[%s1595_s3 + $0x108] sm:$0xff]   ;;  %v1245_v38 = vld [vmem:[%s1595_s3 + $0x110] sm:$0xff]  }
 0x14e   : > { %v352_v44 = vadd.f32 1e-05, %v350_v39  ;;  %v1246_v39 = vld [vmem:[%s1595_s3 + $0x158] sm:$0xff]  }
 0x150   : > { %1258 = vrsqrt.f32 %v352_v44  ;;  %v1247_v44 = vld [vmem:[%s1595_s3 + $0x118] sm:$0xff]  }
 0x156   : > { %v1485_v54 = vpop.eup %1256 }
 0x157   : > { %v356_v58 = vmul.f32 %v1485_v54, %v1343_v30  ;;  %v358_v59 = vmul.f32 %v1485_v54, %v1347_v33  ;;  %v355_v61 = vmul.f32 %v1485_v54, %v1341_v29  ;;  %v357_v63 = vmul.f32 %v1485_v54, %v1345_v31 }
 0x158   : > { %v360_v30 = vmul.f32 %v1485_v54, %v1363_v43  ;;  %v414_v29 = vrot.slane %v1490_v55, %v370_v50  ;;  %v434_v43 = vrot.slane %v1490_v55, %v390_v53  ;;  %v1250_v50 = vld [vmem:[%s1595_s3 + $0x168] sm:$0xff]  }
 0x159   : > { %v399_v3 = vmul.f32 %v375_v57, %v356_v58  ;;  %v401_v7 = vmul.f32 %v383_v60, %v358_v59  ;;  %v398_v9 = vmul.f32 %v371_v62, %v355_v61  ;;  %v400_v11 = vmul.f32 %v379_v0, %v357_v63  ;;  %v1251_v53 = vld [vmem:[%s1595_s3 + $0x128] sm:$0xff]   ;;  %v1254_v61 = vld [vmem:[%s1595_s3 + $0x178] sm:$0xff]  }
 0x15a   : > { %v1508_v33 = vpop.eup %1258  ;;  %v359_v59 = vmul.f32 %v1485_v54, %v1353_v37  ;;  %v1255_v37 = vld [vmem:[%s1595_s3 + $0x138] sm:$0xff]  }
 0x15b   : > { %v362_v31 = vmul.f32 %v1508_v33, %v1359_v41  ;;  %v364_v6 = vmul.f32 %v1508_v33, %v1367_v46  ;;  %v361_v8 = vmul.f32 %v1508_v33, %v1357_v40  ;;  %v363_v10 = vmul.f32 %v1508_v33, %v1361_v42 }
 0x15c   : > { %v366_v14 = vmul.f32 %v1508_v33, %v1381_v56  ;;  %v403_v41 = vmul.f32 %v391_v2, %v360_v30  ;;  %v442_v15 = vadd.f32 %v418_v1, %v399_v3  ;;  %v444_v18 = vadd.f32 %v426_v4, %v401_v7 }
 0x15d   : > { %v405_v12 = vmul.f32 %v375_v57, %v362_v31  ;;  %v407_v13 = vmul.f32 %v383_v60, %v364_v6  ;;  %v404_v16 = vmul.f32 %v371_v62, %v361_v8  ;;  %v406_v46 = vmul.f32 %v379_v0, %v363_v10  ;;  %v1252_v57 = vld [vmem:[%s1595_s3 + $0x170] sm:$0xff]  }
 0x15e   : > { %v409_v20 = vmul.f32 %v391_v2, %v366_v14  ;;  %v441_v21 = vadd.f32 %v414_v29, %v398_v9  ;;  %v443_v22 = vadd.f32 %v422_v5, %v400_v11  ;;  %v446_v26 = vadd.f32 %v434_v43, %v403_v41  ;;  %v1079_v2 = vld [vmem:[%s1596_s4] ss:$0 sm:$0xff] }
 0x15f   : > { %v448_v17 = vadd.f32 %v418_v1, %v405_v12  ;;  %v450_v19 = vadd.f32 %v426_v4, %v407_v13  ;;  %v447_v40 = vadd.f32 %v414_v29, %v404_v16  ;;  %v449_v23 = vadd.f32 %v422_v5, %v406_v46 }
 0x160   : > { %v452_v56 = vadd.f32 %v434_v43, %v409_v20  ;;  %v365_v58 = vmul.f32 %v1508_v33, %v1375_v51  ;;  %v387_v60 = vrot.slane %v1479_v48, %v386_v52  ;;  %v430_v0 = vrot.slane %v1490_v55, %v386_v52 }
 0x161   : > { %v550_v24 = vpack.c.bf16 %v448_v17, %v442_v15  ;;  %v552_v42 = vpack.c.bf16 %v450_v19, %v444_v18  ;;  %v549_v27 = vpack.c.bf16 %v447_v40, %v441_v21  ;;  %v551_v28 = vpack.c.bf16 %v449_v23, %v443_v22 }
 0x162   : > { %v554_v34 = vpack.c.bf16 %v452_v56, %v446_v26  ;;  %v408_v62 = vmul.f32 %v387_v60, %v365_v58  ;;  %v402_v63 = vmul.f32 %v387_v60, %v359_v59 }
 0x163   : > { %882 = vmatprep.mubr.bf16.mxu0 %v550_v24  ;;  %923 = vmatprep.mubr.bf16.mxu1 %v552_v42 }
 0x164   : > { %883 = vmatmul.mubr.bf16.vlgmr.msra.gmra.mrb[0].mxu0 %v549_v27  ;;  %924 = vmatmul.mubr.bf16.vlgmr.msra.gmra.mrb[0].mxu1 %v551_v28  ;;  %v451_v51 = vadd.f32 %v430_v0, %v408_v62  ;;  %v445_v48 = vadd.f32 %v430_v0, %v402_v63 }
 0x165   : > { %1178 = vmatpush3.bf16.msra.mxu0 %v1241_v25  ;;  %964 = vmatprep.mubr.bf16.mxu0 %v554_v34  ;;  %v1128_v34 = vld [vmem:[%s1597_s5] ss:$0 sm:$0xff] }
 0x166   : > { %1179 = vmatprep.subr.bf16.mxu0 %v1242_v32  ;;  %v553_v54 = vpack.c.bf16 %v451_v51, %v445_v48 }
 0x169   : > { %1180 = vmatpush3.bf16.msra.mxu0 %v1243_v35 }
 0x16a   : > { %1181 = vmatprep.subr.bf16.mxu0 %v1244_v36 }
 0x16d   : > { %1182 = vmatpush3.bf16.msra.mxu0 %v1245_v38  ;;  %v1129_v38 = vld [vmem:[%s1598_s6] ss:$0 sm:$0xff] }
 0x16e   : > { %1183 = vmatprep.subr.bf16.mxu0 %v1246_v39 }
 0x171   : > { %1184 = vmatpush3.bf16.msra.mxu0 %v1247_v44 }
 0x172   : > { %1185 = vmatprep.subr.bf16.mxu0 %v1248_v47 }
 0x175   : > { %1186 = vmatpush3.bf16.msra.mxu0 %v1249_v49 }
 0x176   : > { %1187 = vmatprep.subr.bf16.mxu0 %v1250_v50 }
 0x179   : > { %1188 = vmatpush3.bf16.msra.mxu0 %v1251_v53 }
 0x17a   : > { %1189 = vmatprep.subr.bf16.mxu0 %v1252_v57 }
 0x17d   : > { %1190 = vmatpush3.bf16.msra.mxu0 %v1253_v45 }
 0x17e   : > { %1191 = vmatprep.subr.bf16.mxu0 %v1254_v61 }
 0x181   : > { %1192 = vmatpush3.bf16.msra.mxu0 %v1255_v37 }
 0x184   : > { %965 = vmatmul.mubr.bf16.vlgmr.msra.gmra.mrb[4].mxu0 %v553_v54 }
 0x237   : > { %v1149_v1 = vpop.f32.mrb[0].mxu0  ;;  %v1171_v30 = vpop.f32.mrb[0].mxu1 }
 0x238   : > { %v1150_v33 = vpop.f32.mrb[1].mxu0  ;;  %v1172_v3 = vpop.f32.mrb[1].mxu1 }
 0x239   : > { %v1151_v55 = vadd.f32 %v1150_v33, %v1149_v1  ;;  %v1173_v4 = vadd.f32 %v1172_v3, %v1171_v30  ;;  %v1152_v29 = vpop.f32.mrb[2].mxu0  ;;  %v1174_v5 = vpop.f32.mrb[2].mxu1 }
 0x23a   : > { %v1153_v31 = vpop.f32.mrb[3].mxu0  ;;  %v1175_v6 = vpop.f32.mrb[3].mxu1 }
 0x23b   : > { %v885_v7 = vadd.f32 %v1151_v55, %v1079_v2  ;;  %v1154_v43 = vadd.f32 %v1153_v31, %v1152_v29  ;;  %v1176_v8 = vadd.f32 %v1175_v6, %v1174_v5 }
 0x23d   : > { %v926_v9 = vadd.f32 %v1173_v4, %v885_v7  ;;  %v888_v10 = vadd.f32 %v1154_v43, %v1079_v2 }
 0x23f   : > { %v929_v11 = vadd.f32 %v1176_v8, %v888_v10 }
 0x257   : > { %v1193_v12 = vpop.f32.mrb[4].mxu0 }
 0x258   : > { %v1194_v13 = vpop.f32.mrb[5].mxu0 }
 0x259   : > { %v1195_v14 = vadd.f32 %v1194_v13, %v1193_v12  ;;  %v1196_v41 = vpop.f32.mrb[6].mxu0 }
 0x25a   : > { %v1197_v15 = vpop.f32.mrb[7].mxu0 }
 0x25b   : > { %v1198_v16 = vadd.f32 %v1197_v15, %v1196_v41  ;;  %v967_v46 = vadd.f32 %v1195_v14, %v926_v9 }
 0x25d   : > { %975 = vadd.xlane.f32.xlu0 %v967_v46  ;;  %v970_v17 = vadd.f32 %v1198_v16, %v929_v11 }
 0x25f   : > { %977 = vadd.xlane.f32.xlu1 %v970_v17 }
 0x2ea   : > { %v976_v18 = vpop.xlane.xlu0 %975 }
 0x2eb   : > { %v980_v19 = vmul.f32 0.0078125, %v976_v18 }
 0x2ec   : > { %v978_v20 = vpop.xlane.xlu1 %977 }
 0x2ed   : > { %v982_v21 = vsub.f32 %v967_v46, %v980_v19  ;;  %v981_v40 = vmul.f32 0.0078125, %v978_v20 }
 0x2ef   : > { %v983_v22 = vsub.f32 %v970_v17, %v981_v40  ;;  %v984_v23 = vmul.f32 %v982_v21, %v982_v21 }
 0x2f1   : > { %986 = vadd.xlane.f32.xlu0 %v984_v23  ;;  %v985_v24 = vmul.f32 %v983_v22, %v983_v22 }
 0x2f3   : > { %988 = vadd.xlane.f32.xlu1 %v985_v24 }
 0x37e   : > { %v987_v42 = vpop.xlane.xlu0 %986 }
 0x37f   : > { %v990_v25 = vmul.f32 0.0078125, %v987_v42 }
 0x380   : > { %v989_v26 = vpop.xlane.xlu1 %988 }
 0x381   : > { %v992_v56 = vadd.f32 1e-05, %v990_v25  ;;  %v991_v27 = vmul.f32 0.0078125, %v989_v26 }
 0x383   : > { %1260 = vrsqrt.f32 %v992_v56  ;;  %v993_v28 = vadd.f32 1e-05, %v991_v27 }
 0x385   : > { %1262 = vrsqrt.f32 %v993_v28 }
 0x38d   : > { %v1261_v32 = vpop.eup %1260 }
 0x38e   : > { %v996_v35 = vmul.f32 %v1261_v32, %v982_v21 }
 0x38f   : > { %v1263_v36 = vpop.eup %1262 }
 0x390   : > { %v1004_v39 = vmul.f32 %v1128_v34, %v996_v35  ;;  %v997_v44 = vmul.f32 %v1263_v36, %v983_v22 }
 0x392   : > { %v1012_v47 = vadd.f32 %v1129_v38, %v1004_v39  ;;  %v1005_v49 = vmul.f32 %v1128_v34, %v997_v44 }
 0x394   : > { %1014 = vst [vmem:[%s278_s11] sm:$0xff] %v1012_v47  ;;  %v1013_v50 = vadd.f32 %v1129_v38, %v1005_v49 }
 0x396   : > { %1015 = vst [vmem:[%s278_s11 + $0x8] sm:$0xff] %v1013_v50 }
 0x397 PF: > { %s17_s24 = sadd.s32 1, %s1270_s24  }
 0x398   : > { %p14_p4 = scmp.ge.s32.totalorder %s17_s24, 4  }
 0x39a   :  { %16 = sbr.rel (!%p14_p4) target bundleno = 1 (0x1), region = 78 }

// kernel: _lambda_.5
= control target key start
LH: loop header
LB: loop body
LE: loop exit
PB: predicated region body
PF: predicated region fallthrough
CT: control target
= control target key end

     0   :  { %s2774_s21 = smov 0   ;;  %s3230_s0 = inlined_call_operand.vmem [shape: f32[2,24,128], index: 0, kind: input, shape index: {}]   ;;  %s3231_s1 = inlined_call_operand.vmem [shape: f32[1,128], index: 1, kind: input, shape index: {}]   ;;  %s3232_s2 = inlined_call_operand.vmem [shape: f32[1,128], index: 2, kind: input, shape index: {}]   ;;  %s3233_s3 = inlined_call_operand.vmem [shape: bf16[128,384], index: 3, kind: input, shape index: {}]   ;;  %s3234_s4 = inlined_call_operand.vmem [shape: bf16[128,128], index: 4, kind: input, shape index: {}]   ;;  %s3235_s5 = inlined_call_operand.vmem [shape: f32[1,128], index: 5, kind: input, shape index: {}]   ;;  %s3236_s6 = inlined_call_operand.vmem [shape: f32[1,128], index: 6, kind: input, shape index: {}]   ;;  %s3237_s7 = inlined_call_operand.vmem [shape: f32[1,128], index: 7, kind: input, shape index: {}]   ;;  %s3238_s8 = inlined_call_operand.vmem [shape: bf16[128,256], index: 8, kind: input, shape index: {}]   ;;  %s3239_s9 = inlined_call_operand.vmem [shape: f32[1,256], index: 9, kind: input, shape index: {}]   ;;  %s3240_s10 = inlined_call_operand.vmem [shape: bf16[256,128], index: 10, kind: input, shape index: {}]   ;;  %s3241_s11 = inlined_call_operand.vmem [shape: f32[1,128], index: 11, kind: input, shape index: {}]   ;;  %s3242_s12 = inlined_call_operand.vmem [shape: f32[2,24,128], index: 12, kind: output, shape index: {}]  }
   0x1 LB: > { %s2212_s22 = sadd.s32 4294967295, %s2703_s21   ;;  %p2216_p0 = scmp.ge.s32.totalorder %s2703_s21, 1  ;;  %s2703_s21 = sphi %s2774_s21, %s22_s21  }
   0x2   : > { %p362_p1 = scmp.lt.s32.totalorder %s2703_s21, 3 }
   0x4   : > { %p363_p2 = pnand %p2216_p0, %p362_p1 }
   0x5   : > { %p404_p3 = scmp.lt.s32.totalorder (!%p363_p2), %s2212_s22, 1  ;;  %v2542_v3 = vld [vmem:[%s3233_s3 + $0x4] ss:$12 sps:$4 sm:$0xff] (!%p363_p2)   ;;  %v2544_v4 = vld [vmem:[%s3233_s3] ss:$12 sps:$4 sm:$0xff] (!%p363_p2)   ;;  %v2705_v35 = vmov (!%p363_p2), 0  }
   0x6   : > { %366 = sbr.rel (%p363_p2) target bundleno = 3866 (0xf1a), region = 68  ;;  %v2545_v5 = vld [vmem:[%s3233_s3 + $0x8] ss:$12 sps:$4 sm:$0xff] (!%p363_p2)   ;;  %634 = vmatprep.subr.bf16.mxu0 (!%p363_p2), %v2542_v3  ;;  %v2548_v19 = vld [vmem:[%s3233_s3 + $0x18] ss:$12 sps:$4 sm:$0xff] (!%p363_p2)   ;;  %666 = vmatprep.mubr.bf16.mxu0 (!%p363_p2), %v2705_v35  ;;  %vm759_vm0 = vcmask (!%p363_p2), 261120  }
   0x7   : > { %v2546_v6 = vld [vmem:[%s3233_s3 + $0x1c] ss:$12 sps:$4 sm:$0xff] (!%p363_p2)   ;;  %2401 = vmatprep.subr.bf16.mxu1 (!%p363_p2), %v2545_v5  ;;  %635 = vmatpush1.bf16.msra.mxu0 (!%p363_p2), %v2544_v4  ;;  %v2549_v20 = vld [vmem:[%s3233_s3 + $0x20] ss:$12 sps:$4 sm:$0xff] (!%p363_p2)   ;;  %v2553_v23 = vld [vmem:[%s3233_s3 + $0x38] ss:$12 sps:$4 sm:$0xff] (!%p363_p2)  }
   0x8   : > { %2402 = vmatpush3.bf16.msra.mxu1 (!%p363_p2), %v2545_v5  ;;  %636 = vmatprep.subr.bf16.mxu0 (!%p363_p2), %v2546_v6  ;;  %v2550_v21 = vld [vmem:[%s3233_s3 + $0x34] ss:$12 sps:$4 sm:$0xff] (!%p363_p2)   ;;  %v2552_v22 = vld [vmem:[%s3233_s3 + $0x30] ss:$12 sps:$4 sm:$0xff] (!%p363_p2)   ;;  %v2554_v24 = vld [vmem:[%s3233_s3 + $0x4c] ss:$12 sps:$4 sm:$0xff] (!%p363_p2)  }
   0x9   : > { %2403 = vmatprep.subr.bf16.mxu1 (!%p363_p2), %v2549_v20  ;;  %v2556_v25 = vld [vmem:[%s3233_s3 + $0x48] ss:$12 sps:$4 sm:$0xff] (!%p363_p2)   ;;  %v2557_v26 = vld [vmem:[%s3233_s3 + $0x50] ss:$12 sps:$4 sm:$0xff] (!%p363_p2)   ;;  %v2560_v28 = vld [vmem:[%s3233_s3 + $0x60] ss:$12 sps:$4 sm:$0xff] (!%p363_p2)  }
   0xa   : > { %v2558_v27 = vld [vmem:[%s3233_s3 + $0x64] ss:$12 sps:$4 sm:$0xff] (!%p363_p2)   ;;  %v2561_v29 = vld [vmem:[%s3233_s3 + $0x68] ss:$12 sps:$4 sm:$0xff] (!%p363_p2)   ;;  %v2565_v31 = vld [vmem:[%s3233_s3 + $0x80] ss:$12 sps:$4 sm:$0xff] (!%p363_p2)  }
   0xb   : > { %637 = vmatpush1.bf16.msra.mxu0 (!%p363_p2), %v2548_v19  ;;  %v2562_v30 = vld [vmem:[%s3233_s3 + $0x7c] ss:$12 sps:$4 sm:$0xff] (!%p363_p2)   ;;  %v2564_v32 = vld [vmem:[%s3233_s3 + $0x78] ss:$12 sps:$4 sm:$0xff] (!%p363_p2)   ;;  %v2566_v33 = vld [vmem:[%s3233_s3 + $0x94] ss:$12 sps:$4 sm:$0xff] (!%p363_p2)  }
   0xc   : > { %2404 = vmatpush3.bf16.msra.mxu1 (!%p363_p2), %v2549_v20  ;;  %638 = vmatprep.subr.bf16.mxu0 (!%p363_p2), %v2550_v21  ;;  %v2569_v34 = vld [vmem:[%s3233_s3 + $0x98] ss:$12 sps:$4 sm:$0xff] (!%p363_p2)   ;;  %v2568_v36 = vld [vmem:[%s3233_s3 + $0x90] ss:$12 sps:$4 sm:$0xff] (!%p363_p2)   ;;  %v2572_v39 = vld [vmem:[%s3233_s3 + $0xa8] ss:$12 sps:$4 sm:$0xff] (!%p363_p2)  }
   0xd   : > { %s3244_s22 = smov (!%p404_p3, %s2212_s22), 1  ;;  %2405 = vmatprep.subr.bf16.mxu1 %v2553_v23  ;;  %v2570_v37 = vld [vmem:[%s3233_s3 + $0xac] ss:$12 sps:$4 sm:$0xff]   ;;  %v2573_v38 = vld [vmem:[%s3233_s3 + $0xb0] ss:$12 sps:$4 sm:$0xff]   ;;  %vm867_vm1 = vcmask 1043456  }
   0xe   : > { %s2529_s23 = smul.u32 24, %s3244_s22  ;;  %v2219_v51 = vld [vmem:[%s3231_s1] ss:$0 sm:$0xff]  ;;  %vm823_vm3 = vcmask 195584   ;;  %s2706_s19 = smov 96  }
   0xf   : > { %639 = vmatpush1.bf16.msra.mxu0 %v2552_v22  ;;  %v2220_v57 = vld [vmem:[%s3232_s2] ss:$0 sm:$0xff]  ;;  %s2707_s28 = smov 64   ;;  %s2708_s29 = smov 32  }
  0x10   : > { %s2790_s26 = scalar_lea.vmem %s3230_s0, %s2529_s23  ;;  %2406 = vmatpush3.bf16.msra.mxu1 %v2553_v23  ;;  %640 = vmatprep.subr.bf16.mxu0 %v2554_v24 }
  0x11   : > { %v415_v0 = vld [vmem:[%s2790_s26] sm:$0xff]  ;;  %v417_v1 = vld [vmem:[%s2790_s26 + $0x10] sm:$0xff]  ;;  %v416_v2 = vld [vmem:[%s2790_s26 + $0x8] sm:$0xff]  ;;  %2407 = vmatprep.subr.bf16.mxu1 %v2557_v26 }
  0x12   : > { %420 = vadd.xlane.f32.xlu0 %v415_v0  ;;  %424 = vadd.xlane.f32.xlu1 %v417_v1 }
  0x13   : > { %641 = vmatpush1.bf16.msra.mxu0 %v2556_v25  ;;  %v749_v25 = vlaneseq }
  0x14   : > { %2408 = vmatpush3.bf16.msra.mxu1 %v2557_v26  ;;  %642 = vmatprep.subr.bf16.mxu0 %v2558_v27 }
  0x15   : > { %2409 = vmatprep.subr.bf16.mxu1 %v2561_v29  ;;  %v2921_v26 = vand.u32 127, %v749_v25 }
  0x16   : > { %422 = vadd.xlane.f32.xlu0 %v416_v2 }
  0x17   : > { %643 = vmatpush1.bf16.msra.mxu0 %v2560_v28  ;;  %vm751_vm2 = vcmp.lt.s32.totalorder %v2921_v26, 17  ;;  %v2578_v26 = vld [vmem:[%s3234_s4 + $0x20] sm:$0xff]  }
  0x18   : > { %2410 = vmatpush3.bf16.msra.mxu1 %v2561_v29  ;;  %644 = vmatprep.subr.bf16.mxu0 %v2562_v30 }
  0x19   : > { %2411 = vmatprep.subr.bf16.mxu1 %v2565_v31 }
  0x1b   : > { %645 = vmatpush1.bf16.msra.mxu0 %v2564_v32 }
  0x1c   : > { %2412 = vmatpush3.bf16.msra.mxu1 %v2565_v31  ;;  %646 = vmatprep.subr.bf16.mxu0 %v2566_v33 }
  0x1d   : > { %2413 = vmatprep.subr.bf16.mxu1 %v2569_v34 }
  0x1f   : > { %647 = vmatpush1.bf16.msra.mxu0 %v2568_v36 }
  0x20   : > { %2414 = vmatpush3.bf16.msra.mxu1 %v2569_v34  ;;  %648 = vmatprep.subr.bf16.mxu0 %v2570_v37 }
  0x21   : > { %2415 = vmatprep.subr.bf16.mxu1 %v2573_v38 }
  0x23   : > { %649 = vmatpush1.bf16.msra.mxu0 %v2572_v39 }
  0x24   : > { %2416 = vmatpush3.bf16.msra.mxu1 %v2573_v38 }
  0x9f   : > { %v421_v7 = vpop.xlane.xlu0 %420  ;;  %v425_v8 = vpop.xlane.xlu1 %424 }
  0xa0   : > { %v427_v9 = vmul.f32 0.0078125, %v421_v7  ;;  %v429_v10 = vmul.f32 0.0078125, %v425_v8 }
  0xa2   : > { %v2807_v11 = vsub.f32 %v415_v0, %v427_v9  ;;  %v2809_v12 = vsub.f32 %v417_v1, %v429_v10 }
  0xa3   : > { %v423_v13 = vpop.xlane.xlu0 %422 }
  0xa4   : > { %v428_v14 = vmul.f32 0.0078125, %v423_v13  ;;  %v433_v15 = vmul.f32 %v2807_v11, %v2807_v11  ;;  %v435_v17 = vmul.f32 %v2809_v12, %v2809_v12 }
  0xa6   : > { %v2813_v16 = vsub.f32 %v416_v2, %v428_v14  ;;  %436 = vadd.xlane.f32.xlu1 %v433_v15 }
  0xa8   : > { %v434_v18 = vmul.f32 %v2813_v16, %v2813_v16 }
  0xaa   : > { %440 = vadd.xlane.f32.xlu1 %v435_v17  ;;  %438 = vadd.xlane.f32.xlu0 %v434_v18 }
 0x133   : > { %v437_v40 = vpop.xlane.xlu1 %436 }
 0x134   : > { %v442_v41 = vmul.f32 0.0078125, %v437_v40 }
 0x136   : > { %v445_v42 = vadd.f32 1e-05, %v442_v41 }
 0x137   : > { %v441_v43 = vpop.xlane.xlu1 %440  ;;  %v439_v44 = vpop.xlane.xlu0 %438 }
 0x138   : > { %2622 = vrsqrt.f32 %v445_v42  ;;  %v444_v45 = vmul.f32 0.0078125, %v441_v43  ;;  %v443_v46 = vmul.f32 0.0078125, %v439_v44 }
 0x13a   : > { %v447_v47 = vadd.f32 1e-05, %v444_v45  ;;  %v446_v48 = vadd.f32 1e-05, %v443_v46 }
 0x13c   : > { %2624 = vrsqrt.f32 %v447_v47 }
 0x13d   : > { %2626 = vrsqrt.f32 %v446_v48 }
 0x142   : > { %v2623_v49 = vpop.eup %2622 }
 0x143   : > { %v451_v50 = vmul.f32 %v2623_v49, %v2807_v11 }
 0x145   : > { %v460_v56 = vmul.f32 %v2219_v51, %v451_v50 }
 0x146   : > { %v2625_v52 = vpop.eup %2624 }
 0x147   : > { %v2627_v53 = vpop.eup %2626  ;;  %v453_v54 = vmul.f32 %v2625_v52, %v2809_v12  ;;  %v469_v61 = vadd.f32 %v2220_v57, %v460_v56 }
 0x148   : > { %v452_v55 = vmul.f32 %v2627_v53, %v2813_v16 }
 0x149   : > { %v462_v58 = vmul.f32 %v2219_v51, %v453_v54 }
 0x14a   : > { %v461_v59 = vmul.f32 %v2219_v51, %v452_v55 }
 0x14b   : > { %v471_v60 = vadd.f32 %v2220_v57, %v462_v58 }
 0x14c   : > { %v470_v62 = vadd.f32 %v2220_v57, %v461_v59 }
 0x14d   : > { %v505_v63 = vpack.c.bf16 %v471_v60, %v471_v60 }
 0x14e   : > { %v504_v0 = vpack.c.bf16 %v470_v62, %v469_v61 }
 0x150   : > { %667 = vmatmul.mubr.bf16.vlgmr.msra.gmra.mrb[0].mxu0 %v504_v0  ;;  %2417 = vmatprep.mubr.bf16.mxu1 %v504_v0 }
 0x151   : > { %2418 = vmatmul.mubr.bf16.vlgmr.msra.gmra.mrb[0].mxu1 %v505_v63  ;;  %676 = vmatprep.mubr.bf16.mxu0 %v2705_v35 }
 0x158   : > { %677 = vmatmul.mubr.bf16.gmra.mrb[4].mxu0 %v505_v63 }
 0x223   : > { %v668_v1 = vpop.f32.mrb[0].mxu0 }
 0x224   : > { %v670_v2 = vpop.f32.mrb[1].mxu0  ;;  %v2419_v3 = vpop.f32.mrb[0].mxu1  ;;  %v752_v6 = vmul.f32 0.17677669, %v668_v1 }
 0x225   : > { %v672_v4 = vpop.f32.mrb[2].mxu0  ;;  %v719_v5 = vpop.f32.mrb[1].mxu1  ;;  %v2902_v15 = vpack.c.bf16 %v2419_v3, %v2419_v3 }
 0x226   : > { %v753_v7 = vmul.f32 0.17677669, %v672_v4  ;;  %v674_v8 = vpop.f32.mrb[3].mxu0  ;;  %v2420_v9 = vpop.f32.mrb[2].mxu1  ;;  %v2574_v4 = vld [vmem:[%s3234_s4] sm:$0xff]  }
 0x227   : > { %v2890_v10 = vpack.c.bf16 %v674_v8, %v670_v2  ;;  %v722_v11 = vpop.f32.mrb[3].mxu1  ;;  %v869_v21 = vsel %vm867_vm1, %v2902_v15, 0 }
 0x228   : > { %v2892_v12 = vpack.c.bf16 %v753_v7, %v752_v6  ;;  %v2894_v13 = vpack.c.bf16 %v722_v11, %v719_v5  ;;  %v2575_v7 = vld [vmem:[%s3234_s4 + $0x8] sm:$0xff]  }
 0x229   : > { %2517 = vmatprep.subr.msk.bf16.mxu0 %vm759_vm0, %v2890_v10  ;;  %v767_v14 = vsel %vm759_vm0, %v2890_v10, 0 }
 0x22a   : > { %2422 = vmatpush3.bf16.xpose.msra.mxu0 %v767_v14  ;;  %2425 = vmatprep.mubr.msk.bf16.mxu0 %vm759_vm0, %v2892_v12 }
 0x22b   : > { %2429 = vmatprep.subr.bf16.mxu1 %v2894_v13  ;;  %v678_v16 = vpop.f32.mrb[4].mxu0 }
 0x22c   : > { %2430 = vmatpush3.bf16.msra.mxu1 %v2894_v13  ;;  %v680_v17 = vpop.f32.mrb[5].mxu0  ;;  %v754_v23 = vmul.f32 0.17677669, %v678_v16 }
 0x22d   : > { %v2906_v18 = vpack.c.bf16 %v680_v17, %v680_v17  ;;  %2519 = vmatprep.subr.msk.bf16.mxu1 %vm867_vm1, %v2902_v15  ;;  %v682_v19 = vpop.f32.mrb[6].mxu0 }
 0x22e   : > { %v683_v20 = vpop.f32.mrb[7].mxu0  ;;  %v2916_v24 = vpack.c.bf16 %v754_v23, %v754_v23 }
 0x22f   : > { %2518 = vmatprep.subr.msk.bf16.mxu0 %vm759_vm0, %v2906_v18  ;;  %v770_v22 = vsel %vm759_vm0, %v2906_v18, 0 }
 0x230   : > { %2432 = vmatpush3.bf16.msra.mxu1 %v869_v21 }
 0x232   : > { %2424 = vmatpush3.bf16.xpose.msra.mxu0 %v770_v22 }
 0x239   : > { %2426 = vmatmul.mubr.msk.bf16.vlgmr.msra.gmra.mrb[8].mxu0 %vm759_vm0, %v2916_v24 }
 0x30c   : > { %v2427_v27 = vpop.f32.mrb[8].mxu0 }
 0x30d   : > { %v806_v28 = vpop.f32.mrb[9].mxu0  ;;  %v822_v33 = vsel %vm751_vm2, %v2427_v27, -1e+30 }
 0x30e   : > { %v820_v29 = vsel %vm751_vm2, %v806_v28, -1e+30  ;;  %v2428_v30 = vpop.f32.mrb[10].mxu0  ;;  %v830_v37 = vsel %vm823_vm3, %v822_v33, -inf }
 0x30f   : > { %v809_v31 = vpop.f32.mrb[11].mxu0  ;;  %v824_v32 = vsel %vm823_vm3, %v820_v29, -inf }
 0x310   : > { %v821_v34 = vsel %vm751_vm2, %v809_v31, -1e+30  ;;  %825 = vmax.xlane.f32.xlu0 %v824_v32 }
 0x311   : > { %v827_v36 = vsel %vm823_vm3, %v821_v34, -inf }
 0x312   : > { %828 = vmax.xlane.f32.xlu1 %v827_v36 }
 0x314   : > { %831 = vmax.xlane.f32.xlu0 %v830_v37 }
 0x39d   : > { %v826_v38 = vpop.xlane.xlu0 %825 }
 0x39e   : > { %v833_v39 = vsub.f32 %v820_v29, %v826_v38 }
 0x39f   : > { %v829_v40 = vpop.xlane.xlu1 %828 }
 0x3a0   : > { %v836_v41 = vmul.f32 1.442695, %v833_v39  ;;  %v834_v42 = vsub.f32 %v821_v34, %v829_v40 }
 0x3a1   : > { %v832_v43 = vpop.xlane.xlu0 %831 }
 0x3a2   : > { %2628 = vpow2.f32 %v836_v41  ;;  %v838_v44 = vmul.f32 1.442695, %v834_v42  ;;  %v835_v45 = vsub.f32 %v822_v33, %v832_v43 }
 0x3a4   : > { %2630 = vpow2.f32 %v838_v44  ;;  %v840_v46 = vmul.f32 1.442695, %v835_v45 }
 0x3a6   : > { %2632 = vpow2.f32 %v840_v46 }
 0x3ac   : > { %v2629_v47 = vpop.eup %2628 }
 0x3ad   : > { %v842_v48 = vsel %vm823_vm3, %v2629_v47, 0.0 }
 0x3ae   : > { %v2631_v49 = vpop.eup %2630  ;;  %843 = vadd.xlane.f32.xlu1 %v842_v48 }
 0x3af   : > { %v845_v50 = vsel %vm823_vm3, %v2631_v49, 0.0 }
 0x3b0   : > { %v2633_v51 = vpop.eup %2632  ;;  %846 = vadd.xlane.f32.xlu0 %v845_v50 }
 0x3b1   : > { %v848_v52 = vsel %vm823_vm3, %v2633_v51, 0.0 }
 0x3b2   : > { %849 = vadd.xlane.f32.xlu1 %v848_v52 }
 0x3c3   : > { %931 = vrot.lane.b32.xlu1 %v2906_v18, %s2706_s19 }
 0x3c6   : > { %929 = vrot.lane.b32.xlu0 %v2890_v10, %s2706_s19 }
 0x3c7   : > { %923 = vrot.lane.b32.xlu1 %v2892_v12, %s2706_s19 }
 0x3cb   : > { %925 = vrot.lane.b32.xlu1 %v2916_v24, %s2706_s19 }
 0x43b   : > { %v844_v53 = vpop.xlane.xlu1 %843 }
 0x43c   : > { %2634 = vrcp.f32 %v844_v53 }
 0x43d   : > { %v847_v54 = vpop.xlane.xlu0 %846 }
 0x43e   : > { %2636 = vrcp.f32 %v847_v54 }
 0x43f   : > { %v850_v55 = vpop.xlane.xlu1 %849 }
 0x440   : > { %2638 = vrcp.f32 %v850_v55 }
 0x441   : > { %v930_v56 = vpop.permute.xlu0 %929 }
 0x442   : > { %2520 = vmatprep.subr.msk.bf16.mxu1 %vm759_vm0, %v930_v56  ;;  %v940_v2 = vsel %vm759_vm0, %v930_v56, 0 }
 0x443   : > { %v932_v59 = vpop.permute.xlu1 %931 }
 0x444   : > { %v943_v5 = vsel %vm759_vm0, %v932_v59, 0 }
 0x446   : > { %v2635_v57 = vpop.eup %2634 }
 0x447   : > { %v854_v60 = vmul.f32 %v2635_v57, %v2629_v47  ;;  %v924_v3 = vpop.permute.xlu1 %923 }
 0x448   : > { %v2637_v58 = vpop.eup %2636 }
 0x449   : > { %v855_v61 = vmul.f32 %v2637_v58, %v2631_v49 }
 0x44a   : > { %v2639_v62 = vpop.eup %2638 }
 0x44b   : > { %v856_v63 = vmul.f32 %v2639_v62, %v2633_v51  ;;  %v857_v0 = vpack.c.bf16 %v855_v61, %v854_v60  ;;  %v926_v6 = vpop.permute.xlu1 %925 }
 0x44d   : > { %2433 = vmatprep.mubr.msk.bf16.mxu1 %vm823_vm3, %v857_v0  ;;  %v858_v1 = vpack.c.bf16 %v856_v63, %v856_v63  ;;  %v2577_v63 = vld [vmem:[%s3234_s4 + $0x18] sm:$0xff]  }
 0x44f   : > { %2434 = vmatmul.mubr.msk.bf16.vlgmr.msra.gmra.mrb[4].mxu1 %vm823_vm3, %v858_v1 }
 0x450   : > { %2438 = vmatpush3.bf16.xpose.msra.mxu1 %v940_v2  ;;  %2441 = vmatprep.mubr.msk.bf16.mxu1 %vm759_vm0, %v924_v3 }
 0x451   : > { %2521 = vmatprep.subr.msk.bf16.mxu1 %vm759_vm0, %v932_v59 }
 0x458   : > { %2440 = vmatpush3.bf16.xpose.msra.mxu1 %v943_v5 }
 0x459   : > { %2461 = vmatprep.subr.bf16.mxu1 %v2574_v4 }
 0x45f   : > { %2442 = vmatmul.mubr.msk.bf16.vlgmr.msra.gmra.mrb[8].mxu1 %vm759_vm0, %v926_v6 }
 0x460   : > { %2462 = vmatpush3.bf16.msra.mxu1 %v2574_v4 }
 0x461   : > { %2463 = vmatprep.subr.bf16.mxu1 %v2575_v7 }
 0x464   : > { %2464 = vmatpush3.bf16.msra.mxu1 %v2575_v7 }
 0x522   : > { %v2435_v8 = vpop.f32.mrb[4].mxu1 }
 0x523   : > { %v905_v9 = vpop.f32.mrb[5].mxu1  ;;  %v920_v17 = vpack.c.bf16 %v2435_v8, %v2435_v8 }
 0x524   : > { %v2436_v11 = vpop.f32.mrb[6].mxu1 }
 0x525   : > { %v908_v14 = vpop.f32.mrb[7].mxu1 }
 0x526   : > { %v919_v16 = vpack.c.bf16 %v908_v14, %v905_v9 }
 0x528   : > { %2465 = vmatprep.mubr.msk.bf16.mxu1 %vm759_vm0, %v919_v16 }
 0x529   : > { %2466 = vmatmul.mubr.msk.bf16.vlgmr.msra.gmra.mrb[12].mxu1 %vm759_vm0, %v920_v17 }
 0x532   : > { %v2443_v19 = vpop.f32.mrb[8].mxu1 }
 0x533   : > { %v979_v20 = vpop.f32.mrb[9].mxu1  ;;  %v995_v28 = vsel %vm751_vm2, %v2443_v19, -1e+30 }
 0x534   : > { %v993_v21 = vsel %vm751_vm2, %v979_v20, -1e+30  ;;  %v2444_v22 = vpop.f32.mrb[10].mxu1  ;;  %v1002_v31 = vsel %vm823_vm3, %v995_v28, -inf }
 0x535   : > { %v982_v23 = vpop.f32.mrb[11].mxu1  ;;  %v996_v27 = vsel %vm823_vm3, %v993_v21, -inf }
 0x536   : > { %v994_v29 = vsel %vm751_vm2, %v982_v23, -1e+30  ;;  %997 = vmax.xlane.f32.xlu0 %v996_v27 }
 0x537   : > { %v999_v30 = vsel %vm823_vm3, %v994_v29, -inf }
 0x538   : > { %1000 = vmax.xlane.f32.xlu1 %v999_v30 }
 0x53a   : > { %1003 = vmax.xlane.f32.xlu0 %v1002_v31 }
 0x5c3   : > { %v998_v32 = vpop.xlane.xlu0 %997 }
 0x5c4   : > { %v1005_v33 = vsub.f32 %v993_v21, %v998_v32 }
 0x5c5   : > { %v1001_v34 = vpop.xlane.xlu1 %1000 }
 0x5c6   : > { %v1008_v36 = vmul.f32 1.442695, %v1005_v33  ;;  %v1006_v37 = vsub.f32 %v994_v29, %v1001_v34 }
 0x5c7   : > { %v1004_v38 = vpop.xlane.xlu0 %1003 }
 0x5c8   : > { %2640 = vpow2.f32 %v1008_v36  ;;  %v1010_v39 = vmul.f32 1.442695, %v1006_v37  ;;  %v1007_v40 = vsub.f32 %v995_v28, %v1004_v38 }
 0x5ca   : > { %2642 = vpow2.f32 %v1010_v39  ;;  %v1012_v41 = vmul.f32 1.442695, %v1007_v40 }
 0x5cc   : > { %2644 = vpow2.f32 %v1012_v41 }
 0x5d2   : > { %v2641_v42 = vpop.eup %2640 }
 0x5d3   : > { %v1014_v43 = vsel %vm823_vm3, %v2641_v42, 0.0 }
 0x5d4   : > { %v2643_v44 = vpop.eup %2642  ;;  %1015 = vadd.xlane.f32.xlu0 %v1014_v43 }
 0x5d5   : > { %v1017_v47 = vsel %vm823_vm3, %v2643_v44, 0.0 }
 0x5d6   : > { %v2645_v45 = vpop.eup %2644 }
 0x5d7   : > { %v1020_v46 = vsel %vm823_vm3, %v2645_v45, 0.0 }
 0x5d8   : > { %1021 = vadd.xlane.f32.xlu1 %v1020_v46  ;;  %1018 = vadd.xlane.f32.xlu0 %v1017_v47 }
 0x5e9   : > { %1035 = vrot.lane.b32.xlu1 %v2902_v15, %s2706_s19 }
 0x5ed   : > { %1233 = vrot.lane.b32.xlu1 %v2890_v10, %s2707_s28 }
 0x5ee   : > { %1033 = vrot.lane.b32.xlu0 %v2894_v13, %s2706_s19 }
 0x5f1   : > { %1235 = vrot.lane.b32.xlu1 %v2906_v18, %s2707_s28 }
 0x5f2   : > { %1229 = vrot.lane.b32.xlu0 %v2892_v12, %s2707_s28 }
 0x5f5   : > { %1231 = vrot.lane.b32.xlu1 %v2916_v24, %s2707_s28 }
 0x5f6   : > { %1472 = vrot.lane.b32.xlu0 %v2890_v10, %s2708_s29 }
 0x5f9   : > { %1474 = vrot.lane.b32.xlu1 %v2906_v18, %s2708_s29 }
 0x5fa   : > { %1468 = vrot.lane.b32.xlu0 %v2892_v12, %s2708_s29  ;;  %v2576_v12 = vld [vmem:[%s3234_s4 + $0x10] sm:$0xff]  }
 0x5fc   : > { %v2990_v48 = vpop.f32.mrb[12].mxu1 }
 0x5fd   : > { %1470 = vrot.lane.b32.xlu1 %v2916_v24, %s2708_s29  ;;  %v2994_v49 = vpop.f32.mrb[13].mxu1 }
 0x5fe   : > { %v2468_v50 = vpop.f32.mrb[14].mxu1 }
 0x5ff   : > { %v2996_v51 = vpop.f32.mrb[15].mxu1 }
 0x661   : > { %v1016_v52 = vpop.xlane.xlu0 %1015 }
 0x662   : > { %2646 = vrcp.f32 %v1016_v52 }
 0x665   : > { %v1019_v53 = vpop.xlane.xlu0 %1018  ;;  %v1022_v10 = vpop.xlane.xlu1 %1021 }
 0x666   : > { %2648 = vrcp.f32 %v1019_v53 }
 0x667   : > { %2650 = vrcp.f32 %v1022_v10 }
 0x669   : > { %v1034_v18 = vpop.permute.xlu0 %1033  ;;  %v1036_v54 = vpop.permute.xlu1 %1035 }
 0x66a   : > { %2445 = vmatprep.subr.bf16.mxu0 %v1034_v18  ;;  %v1045_v55 = vsel %vm867_vm1, %v1036_v54, 0 }
 0x66b   : > { %2446 = vmatpush3.bf16.msra.mxu0 %v1034_v18 }
 0x66c   : > { %2522 = vmatprep.subr.msk.bf16.mxu0 %vm867_vm1, %v1036_v54  ;;  %v2647_v24 = vpop.eup %2646 }
 0x66d   : > { %v1026_v58 = vmul.f32 %v2647_v24, %v2641_v42  ;;  %v1234_v0 = vpop.permute.xlu1 %1233  ;;  %v1230_v7 = vpop.permute.xlu0 %1229 }
 0x66e   : > { %v1244_v8 = vsel %vm759_vm0, %v1234_v0, 0 }
 0x66f   : > { %2448 = vmatpush3.bf16.msra.mxu0 %v1045_v55 }
 0x670   : > { %v2649_v56 = vpop.eup %2648  ;;  %2453 = vmatprep.subr.bf16.mxu0 %v2576_v12 }
 0x671   : > { %v2651_v57 = vpop.eup %2650  ;;  %v1027_v59 = vmul.f32 %v2649_v56, %v2643_v44  ;;  %v1236_v9 = vpop.permute.xlu1 %1235 }
 0x672   : > { %v1028_v60 = vmul.f32 %v2651_v57, %v2645_v45  ;;  %v1247_v11 = vsel %vm759_vm0, %v1236_v9, 0  ;;  %v1473_v14 = vpop.permute.xlu0 %1472 }
 0x673   : > { %v1029_v61 = vpack.c.bf16 %v1027_v59, %v1026_v58  ;;  %v1483_v17 = vsel %vm759_vm0, %v1473_v14, 0 }
 0x674   : > { %v1030_v62 = vpack.c.bf16 %v1028_v60, %v1028_v60 }
 0x675   : > { %2449 = vmatprep.mubr.msk.bf16.mxu0 %vm823_vm3, %v1029_v61  ;;  %v1232_v16 = vpop.permute.xlu1 %1231 }
 0x676   : > { %2450 = vmatmul.mubr.msk.bf16.vlgmr.msra.gmra.mrb[12].mxu0 %vm823_vm3, %v1030_v62  ;;  %v1469_v19 = vpop.permute.xlu0 %1468 }
 0x677   : > { %2454 = vmatpush3.bf16.msra.mxu0 %v2576_v12 }
 0x678   : > { %2455 = vmatprep.subr.bf16.mxu0 %v2577_v63 }
 0x679   : > { %v1475_v20 = vpop.permute.xlu1 %1474 }
 0x67a   : > { %v1486_v21 = vsel %vm759_vm0, %v1475_v20, 0 }
 0x67b   : > { %2456 = vmatpush3.bf16.msra.mxu0 %v2577_v63 }
 0x67c   : > { %2523 = vmatprep.subr.msk.bf16.mxu0 %vm759_vm0, %v1234_v0 }
 0x67d   : > { %v1471_v22 = vpop.permute.xlu1 %1470 }
 0x749   : > { %v2451_v1 = vpop.f32.mrb[12].mxu0 }
 0x74a   : > { %v1081_v2 = vpop.f32.mrb[13].mxu0  ;;  %v1096_v6 = vpack.c.bf16 %v2451_v1, %v2451_v1 }
 0x74b   : > { %v2452_v3 = vpop.f32.mrb[14].mxu0 }
 0x74c   : > { %v1084_v4 = vpop.f32.mrb[15].mxu0 }
 0x74d   : > { %v1095_v5 = vpack.c.bf16 %v1084_v4, %v1081_v2 }
 0x74f   : > { %2457 = vmatprep.mubr.msk.bf16.mxu0 %vm759_vm0, %v1095_v5 }
 0x750   : > { %2458 = vmatmul.mubr.msk.bf16.vlgmr.msra.gmra.mrb[16].mxu0 %vm759_vm0, %v1096_v6 }
 0x751   : > { %2470 = vmatpush3.bf16.xpose.msra.mxu0 %v1244_v8  ;;  %2473 = vmatprep.mubr.msk.bf16.mxu0 %vm759_vm0, %v1230_v7 }
 0x752   : > { %2524 = vmatprep.subr.msk.bf16.mxu0 %vm759_vm0, %v1236_v9 }
 0x759   : > { %2472 = vmatpush3.bf16.xpose.msra.mxu0 %v1247_v11 }
 0x75a   : > { %2526 = vmatprep.subr.msk.bf16.mxu0 %vm759_vm0, %v1473_v14 }
 0x760   : > { %2474 = vmatmul.mubr.msk.bf16.vlgmr.msra.gmra.mrb[20].mxu0 %vm759_vm0, %v1232_v16 }
 0x761   : > { %2494 = vmatpush3.bf16.xpose.msra.mxu0 %v1483_v17  ;;  %2497 = vmatprep.mubr.msk.bf16.mxu0 %vm759_vm0, %v1469_v19 }
 0x762   : > { %2527 = vmatprep.subr.msk.bf16.mxu0 %vm759_vm0, %v1475_v20 }
 0x769   : > { %2496 = vmatpush3.bf16.xpose.msra.mxu0 %v1486_v21 }
 0x770   : > { %2498 = vmatmul.mubr.msk.bf16.vlgmr.msra.gmra.mrb[24].mxu0 %vm759_vm0, %v1471_v22 }
 0x771   : > { %1915 = vmatprep.mubr.bf16.mxu0 %v2705_v35 }
 0x823   : > { %v2459_v23 = vpop.f32.mrb[16].mxu0 }
 0x824   : > { %v3024_v27 = vadd.f32 %v2990_v48, %v2459_v23  ;;  %v1149_v28 = vpop.f32.mrb[17].mxu0 }
 0x825   : > { %v3027_v29 = vadd.f32 %v2994_v49, %v1149_v28  ;;  %v2460_v30 = vpop.f32.mrb[18].mxu0 }
 0x826   : > { %v1152_v31 = vpop.f32.mrb[19].mxu0 }
 0x827   : > { %v3030_v32 = vadd.f32 %v2996_v51, %v1152_v31 }
 0x833   : > { %v2475_v33 = vpop.f32.mrb[20].mxu0 }
 0x834   : > { %v1283_v34 = vpop.f32.mrb[21].mxu0  ;;  %v1299_v40 = vsel %vm751_vm2, %v2475_v33, -1e+30 }
 0x835   : > { %v1297_v36 = vsel %vm751_vm2, %v1283_v34, -1e+30  ;;  %v2476_v37 = vpop.f32.mrb[22].mxu0  ;;  %v1306_v43 = vsel %vm823_vm3, %v1299_v40, -inf }
 0x836   : > { %v1286_v38 = vpop.f32.mrb[23].mxu0  ;;  %v1300_v39 = vsel %vm823_vm3, %v1297_v36, -inf }
 0x837   : > { %v1298_v41 = vsel %vm751_vm2, %v1286_v38, -1e+30  ;;  %1301 = vmax.xlane.f32.xlu0 %v1300_v39 }
 0x838   : > { %v1303_v42 = vsel %vm823_vm3, %v1298_v41, -inf }
 0x839   : > { %1304 = vmax.xlane.f32.xlu1 %v1303_v42  ;;  %v2579_v42 = vld [vmem:[%s3234_s4 + $0x28] sm:$0xff]  }
 0x83b   : > { %1307 = vmax.xlane.f32.xlu0 %v1306_v43 }
 0x843   : > { %v2499_v44 = vpop.f32.mrb[24].mxu0 }
 0x844   : > { %v1522_v45 = vpop.f32.mrb[25].mxu0  ;;  %v1538_v63 = vsel %vm751_vm2, %v2499_v44, -1e+30 }
 0x845   : > { %v2500_v46 = vpop.f32.mrb[26].mxu0  ;;  %v1536_v59 = vsel %vm751_vm2, %v1522_v45, -1e+30  ;;  %v1545_v0 = vsel %vm823_vm3, %v1538_v63, -inf }
 0x846   : > { %v1525_v47 = vpop.f32.mrb[27].mxu0  ;;  %v1539_v61 = vsel %vm823_vm3, %v1536_v59, -inf }
 0x847   : > { %v1537_v60 = vsel %vm751_vm2, %v1525_v47, -1e+30 }
 0x848   : > { %v1542_v62 = vsel %vm823_vm3, %v1537_v60, -inf }
 0x8c4   : > { %v1302_v48 = vpop.xlane.xlu0 %1301 }
 0x8c5   : > { %v1309_v49 = vsub.f32 %v1297_v36, %v1302_v48 }
 0x8c6   : > { %v1305_v50 = vpop.xlane.xlu1 %1304 }
 0x8c7   : > { %v1312_v51 = vmul.f32 1.442695, %v1309_v49  ;;  %v1310_v52 = vsub.f32 %v1298_v41, %v1305_v50 }
 0x8c8   : > { %v1308_v53 = vpop.xlane.xlu0 %1307 }
 0x8c9   : > { %2652 = vpow2.f32 %v1312_v51  ;;  %v1314_v10 = vmul.f32 1.442695, %v1310_v52  ;;  %v1311_v18 = vsub.f32 %v1299_v40, %v1308_v53 }
 0x8cb   : > { %2654 = vpow2.f32 %v1314_v10  ;;  %v1316_v54 = vmul.f32 1.442695, %v1311_v18 }
 0x8cd   : > { %2656 = vpow2.f32 %v1316_v54 }
 0x8d3   : > { %v2653_v12 = vpop.eup %2652 }
 0x8d4   : > { %v1318_v24 = vsel %vm823_vm3, %v2653_v12, 0.0 }
 0x8d5   : > { %v2655_v55 = vpop.eup %2654  ;;  %1319 = vadd.xlane.f32.xlu0 %v1318_v24 }
 0x8d6   : > { %v1321_v58 = vsel %vm823_vm3, %v2655_v55, 0.0 }
 0x8d7   : > { %v2657_v56 = vpop.eup %2656 }
 0x8d8   : > { %v1324_v57 = vsel %vm823_vm3, %v2657_v56, 0.0 }
 0x8d9   : > { %1325 = vadd.xlane.f32.xlu1 %v1324_v57  ;;  %1322 = vadd.xlane.f32.xlu0 %v1321_v58  ;;  %v2580_v57 = vld [vmem:[%s3234_s4 + $0x30] sm:$0xff]   ;;  %v2581_v58 = vld [vmem:[%s3234_s4 + $0x38] sm:$0xff]  }
 0x8ea   : > { %1337 = vrot.lane.b32.xlu1 %v2902_v15, %s2707_s28 }
 0x8ef   : > { %1335 = vrot.lane.b32.xlu0 %v2894_v13, %s2707_s28 }
 0x90e   : > { %1540 = vmax.xlane.f32.xlu1 %v1539_v61  ;;  %1543 = vmax.xlane.f32.xlu0 %v1542_v62 }
 0x912   : > { %1546 = vmax.xlane.f32.xlu0 %v1545_v0 }
 0x962   : > { %v1320_v1 = vpop.xlane.xlu0 %1319 }
 0x963   : > { %2658 = vrcp.f32 %v1320_v1 }
 0x966   : > { %v1323_v2 = vpop.xlane.xlu0 %1322  ;;  %v1326_v3 = vpop.xlane.xlu1 %1325 }
 0x967   : > { %2660 = vrcp.f32 %v1323_v2 }
 0x968   : > { %2662 = vrcp.f32 %v1326_v3 }
 0x96a   : > { %v1336_v4 = vpop.permute.xlu0 %1335  ;;  %v1338_v5 = vpop.permute.xlu1 %1337 }
 0x96b   : > { %2477 = vmatprep.subr.bf16.mxu1 %v1336_v4  ;;  %v1347_v7 = vsel %vm867_vm1, %v1338_v5, 0 }
 0x96c   : > { %2478 = vmatpush3.bf16.msra.mxu1 %v1336_v4 }
 0x96d   : > { %2525 = vmatprep.subr.msk.bf16.mxu1 %vm867_vm1, %v1338_v5  ;;  %v2659_v6 = vpop.eup %2658 }
 0x96e   : > { %v1330_v11 = vmul.f32 %v2659_v6, %v2653_v12 }
 0x970   : > { %2480 = vmatpush3.bf16.msra.mxu1 %v1347_v7 }
 0x971   : > { %v2661_v8 = vpop.eup %2660  ;;  %2485 = vmatprep.subr.bf16.mxu1 %v2578_v26 }
 0x972   : > { %v2663_v9 = vpop.eup %2662  ;;  %v1331_v14 = vmul.f32 %v2661_v8, %v2655_v55 }
 0x973   : > { %v1332_v16 = vmul.f32 %v2663_v9, %v2657_v56 }
 0x974   : > { %v1333_v17 = vpack.c.bf16 %v1331_v14, %v1330_v11 }
 0x975   : > { %v1334_v19 = vpack.c.bf16 %v1332_v16, %v1332_v16 }
 0x976   : > { %2481 = vmatprep.mubr.msk.bf16.mxu1 %vm823_vm3, %v1333_v17 }
 0x977   : > { %2482 = vmatmul.mubr.msk.bf16.vlgmr.msra.gmra.mrb[16].mxu1 %vm823_vm3, %v1334_v19  ;;  %v2694_v19 = vld [vmem:[%s2790_s26] sm:$0xff] }
 0x978   : > { %2486 = vmatpush3.bf16.msra.mxu1 %v2578_v26 }
 0x979   : > { %2487 = vmatprep.subr.bf16.mxu1 %v2579_v42 }
 0x97c   : > { %2488 = vmatpush3.bf16.msra.mxu1 %v2579_v42 }
 0x99b   : > { %v1544_v20 = vpop.xlane.xlu0 %1543  ;;  %v1541_v21 = vpop.xlane.xlu1 %1540 }
 0x99c   : > { %v1549_v22 = vsub.f32 %v1537_v60, %v1544_v20  ;;  %v1548_v28 = vsub.f32 %v1536_v59, %v1541_v21 }
 0x99e   : > { %v1553_v23 = vmul.f32 1.442695, %v1549_v22  ;;  %v1551_v33 = vmul.f32 1.442695, %v1548_v28  ;;  %v2695_v22 = vld [vmem:[%s2790_s26 + $0x8] sm:$0xff]  ;;  %v2696_v28 = vld [vmem:[%s2790_s26 + $0x10] sm:$0xff] }
 0x99f   : > { %v1547_v30 = vpop.xlane.xlu0 %1546 }
 0x9a0   : > { %2664 = vpow2.f32 %v1553_v23  ;;  %v1550_v31 = vsub.f32 %v1538_v63, %v1547_v30 }
 0x9a2   : > { %v1555_v34 = vmul.f32 1.442695, %v1550_v31  ;;  %v2582_v31 = vld [vmem:[%s3238_s8] ss:$8 sps:$4 sm:$0xff]  }
 0x9a4   : > { %2666 = vpow2.f32 %v1555_v34  ;;  %v2587_v34 = vld [vmem:[%s3238_s8 + $0x14] ss:$8 sps:$4 sm:$0xff]  }
 0x9a5   : > { %2668 = vpow2.f32 %v1551_v33  ;;  %v2584_v33 = vld [vmem:[%s3238_s8 + $0x4] ss:$8 sps:$4 sm:$0xff]  }
 0x9a6   : > { %1883 = vmatprep.subr.bf16.mxu0 %v2584_v33  ;;  %v2614_v33 = vld [vmem:[%s3240_s10 + $0x60] sm:$0xff]  }
 0x9a7   : > { %1884 = vmatpush1.bf16.msra.mxu0 %v2582_v31  ;;  %v2612_v31 = vld [vmem:[%s3240_s10 + $0x58] sm:$0xff]  }
 0x9a8   : > { %1885 = vmatprep.subr.bf16.mxu0 %v2587_v34  ;;  %v2615_v34 = vld [vmem:[%s3240_s10 + $0x20] sm:$0xff]  }
 0x9aa   : > { %v2665_v36 = vpop.eup %2664 }
 0x9ab   : > { %v1560_v37 = vsel %vm823_vm3, %v2665_v36, 0.0 }
 0x9ac   : > { %1561 = vadd.xlane.f32.xlu0 %v1560_v37 }
 0x9ae   : > { %v2667_v38 = vpop.eup %2666 }
 0x9af   : > { %v1563_v39 = vsel %vm823_vm3, %v2667_v38, 0.0  ;;  %v2669_v40 = vpop.eup %2668 }
 0x9b0   : > { %1564 = vadd.xlane.f32.xlu1 %v1563_v39  ;;  %v1557_v41 = vsel %vm823_vm3, %v2669_v40, 0.0 }
 0x9b4   : > { %1558 = vadd.xlane.f32.xlu1 %v1557_v41 }
 0x9c2   : > { %1574 = vrot.lane.b32.xlu0 %v2894_v13, %s2708_s29 }
 0x9c5   : > { %1576 = vrot.lane.b32.xlu1 %v2902_v15, %s2708_s29  ;;  %s413_s29 = scalar_lea.vmem %s3242_s12, %s2529_s23 }
 0xa39   : > { %v1562_v43 = vpop.xlane.xlu0 %1561 }
 0xa3a   : > { %2670 = vrcp.f32 %v1562_v43 }
 0xa3d   : > { %v1575_v44 = vpop.permute.xlu0 %1574  ;;  %v1565_v45 = vpop.xlane.xlu1 %1564 }
 0xa3e   : > { %2501 = vmatprep.subr.bf16.mxu1 %v1575_v44 }
 0xa41   : > { %v1559_v46 = vpop.xlane.xlu1 %1558 }
 0xa42   : > { %2672 = vrcp.f32 %v1559_v46 }
 0xa43   : > { %2674 = vrcp.f32 %v1565_v45 }
 0xa44   : > { %v2671_v47 = vpop.eup %2670 }
 0xa45   : > { %v1570_v10 = vmul.f32 %v2671_v47, %v2665_v36  ;;  %v1577_v12 = vpop.permute.xlu1 %1576  ;;  %v2585_v36 = vld [vmem:[%s3238_s8 + $0x10] ss:$8 sps:$4 sm:$0xff]  }
 0xa46   : > { %v1586_v55 = vsel %vm867_vm1, %v1577_v12, 0  ;;  %1886 = vmatpush1.bf16.msra.mxu0 %v2585_v36  ;;  %v2616_v36 = vld [vmem:[%s3240_s10 + $0x68] sm:$0xff]  }
 0xa4a   : > { %v2483_v48 = vpop.f32.mrb[16].mxu1 }
 0xa4b   : > { %v1383_v49 = vpop.f32.mrb[17].mxu1  ;;  %v1398_v18 = vpack.c.bf16 %v2483_v48, %v2483_v48 }
 0xa4c   : > { %v2673_v50 = vpop.eup %2672  ;;  %v2484_v51 = vpop.f32.mrb[18].mxu1 }
 0xa4d   : > { %v1386_v52 = vpop.f32.mrb[19].mxu1  ;;  %v1569_v53 = vmul.f32 %v2673_v50, %v2669_v40  ;;  %v2675_v15 = vpop.eup %2674  ;;  %v2588_v50 = vld [vmem:[%s3238_s8 + $0x20] ss:$8 sps:$4 sm:$0xff]   ;;  %v2593_v51 = vld [vmem:[%s3238_s8 + $0x34] ss:$8 sps:$4 sm:$0xff]  }
 0xa4e   : > { %v1397_v13 = vpack.c.bf16 %v1386_v52, %v1383_v49  ;;  %v1571_v24 = vmul.f32 %v2675_v15, %v2667_v38  ;;  %v2590_v49 = vld [vmem:[%s3238_s8 + $0x24] ss:$8 sps:$4 sm:$0xff]   ;;  %v2591_v52 = vld [vmem:[%s3238_s8 + $0x30] ss:$8 sps:$4 sm:$0xff]   ;;  %v2600_v15 = vld [vmem:[%s3238_s8 + $0x60] ss:$8 sps:$4 sm:$0xff]  }
 0xa4f   : > { %v1572_v54 = vpack.c.bf16 %v1570_v10, %v1569_v53  ;;  %1887 = vmatprep.subr.bf16.mxu0 %v2590_v49  ;;  %v2596_v53 = vld [vmem:[%s3238_s8 + $0x44] ss:$8 sps:$4 sm:$0xff]   ;;  %v2594_v10 = vld [vmem:[%s3238_s8 + $0x40] ss:$8 sps:$4 sm:$0xff]  }
 0xa50   : > { %2489 = vmatprep.mubr.msk.bf16.mxu1 %vm759_vm0, %v1397_v13  ;;  %v1573_v56 = vpack.c.bf16 %v1571_v24, %v1571_v24  ;;  %1888 = vmatpush1.bf16.msra.mxu0 %v2588_v50  ;;  %v2599_v13 = vld [vmem:[%s3238_s8 + $0x54] ss:$8 sps:$4 sm:$0xff]   ;;  %v2603_v24 = vld [vmem:[%s3238_s8 + $0x70] ss:$8 sps:$4 sm:$0xff]  }
 0xa51   : > { %2490 = vmatmul.mubr.msk.bf16.vlgmr.msra.gmra.mrb[20].mxu1 %vm759_vm0, %v1398_v18  ;;  %1889 = vmatprep.subr.bf16.mxu0 %v2593_v51  ;;  %v2597_v18 = vld [vmem:[%s3238_s8 + $0x50] ss:$8 sps:$4 sm:$0xff]  }
 0xa52   : > { %2502 = vmatpush3.bf16.msra.mxu1 %v1575_v44  ;;  %2505 = vmatprep.mubr.msk.bf16.mxu1 %vm823_vm3, %v1572_v54  ;;  %v2602_v54 = vld [vmem:[%s3238_s8 + $0x64] ss:$8 sps:$4 sm:$0xff]  }
 0xa53   : > { %2528 = vmatprep.subr.msk.bf16.mxu1 %vm867_vm1, %v1577_v12  ;;  %v2605_v12 = vld [vmem:[%s3238_s8 + $0x74] ss:$8 sps:$4 sm:$0xff]  }
 0xa54   : > { %1890 = vmatpush1.bf16.msra.mxu0 %v2591_v52 }
 0xa55   : > { %1891 = vmatprep.subr.bf16.mxu0 %v2596_v53 }
 0xa56   : > { %2504 = vmatpush3.bf16.msra.mxu1 %v1586_v55  ;;  %v2606_v55 = vld [vmem:[%s3240_s10 + $0x40] sm:$0xff]  }
 0xa57   : > { %2509 = vmatprep.subr.bf16.mxu1 %v2580_v57 }
 0xa58   : > { %1892 = vmatpush1.bf16.msra.mxu0 %v2594_v10 }
 0xa59   : > { %2506 = vmatmul.mubr.msk.bf16.vlgmr.msra.gmra.mrb[24].mxu1 %vm823_vm3, %v1573_v56  ;;  %1893 = vmatprep.subr.bf16.mxu0 %v2599_v13  ;;  %v2607_v56 = vld [vmem:[%s3240_s10] sm:$0xff]  }
 0xa5a   : > { %2510 = vmatpush3.bf16.msra.mxu1 %v2580_v57  ;;  %v2608_v57 = vld [vmem:[%s3240_s10 + $0x48] sm:$0xff]  }
 0xa5b   : > { %2511 = vmatprep.subr.bf16.mxu1 %v2581_v58 }
 0xa5c   : > { %1894 = vmatpush1.bf16.msra.mxu0 %v2597_v18 }
 0xa5d   : > { %1895 = vmatprep.subr.bf16.mxu0 %v2602_v54 }
 0xa5e   : > { %2512 = vmatpush3.bf16.msra.mxu1 %v2581_v58  ;;  %v2609_v58 = vld [vmem:[%s3240_s10 + $0x8] sm:$0xff]  }
 0xa5f   : > { %2373 = vmatprep.subr.bf16.mxu1 %v2606_v55 }
 0xa60   : > { %1896 = vmatpush1.bf16.msra.mxu0 %v2600_v15 }
 0xa61   : > { %1897 = vmatprep.subr.bf16.mxu0 %v2605_v12 }
 0xa64   : > { %1898 = vmatpush1.bf16.msra.mxu0 %v2603_v24 }
 0xb24   : > { %v2491_v59 = vpop.f32.mrb[20].mxu1 }
 0xb25   : > { %v1467_v60 = vadd.f32 %v2491_v59, %v3024_v27  ;;  %v1451_v61 = vpop.f32.mrb[21].mxu1 }
 0xb26   : > { %v1465_v62 = vadd.f32 %v1451_v61, %v3027_v29  ;;  %v2492_v63 = vpop.f32.mrb[22].mxu1  ;;  %v2277_v29 = vld [vmem:[%s3235_s5] ss:$0 sm:$0xff] }
 0xb27   : > { %v1454_v0 = vpop.f32.mrb[23].mxu1 }
 0xb28   : > { %v1466_v1 = vadd.f32 %v1454_v0, %v3030_v32 }
 0xb2c   : > { %v2507_v2 = vpop.f32.mrb[24].mxu1 }
 0xb2d   : > { %v1622_v3 = vpop.f32.mrb[25].mxu1  ;;  %v1637_v6 = vpack.c.bf16 %v2507_v2, %v2507_v2 }
 0xb2e   : > { %v2508_v4 = vpop.f32.mrb[26].mxu1 }
 0xb2f   : > { %v1625_v5 = vpop.f32.mrb[27].mxu1 }
 0xb30   : > { %v1636_v26 = vpack.c.bf16 %v1625_v5, %v1622_v3  ;;  %v2278_v5 = vld [vmem:[%s3236_s6] ss:$0 sm:$0xff] }
 0xb32   : > { %2513 = vmatprep.mubr.msk.bf16.mxu1 %vm759_vm0, %v1636_v26 }
 0xb33   : > { %2514 = vmatmul.mubr.msk.bf16.vlgmr.msra.gmra.mrb[28].mxu1 %vm759_vm0, %v1637_v6 }
 0xb34   : > { %2374 = vmatpush3.bf16.msra.mxu1 %v2607_v56 }
 0xb35   : > { %2375 = vmatprep.subr.bf16.mxu1 %v2608_v57 }
 0xb38   : > { %2376 = vmatpush3.bf16.msra.mxu1 %v2609_v58 }
 0xc06   : > { %v2515_v27 = vpop.f32.mrb[28].mxu1 }
 0xc07   : > { %v1706_v7 = vadd.f32 %v2515_v27, %v1467_v60  ;;  %v1690_v32 = vpop.f32.mrb[29].mxu1 }
 0xc08   : > { %v1704_v8 = vadd.f32 %v1690_v32, %v1465_v62  ;;  %v2516_v9 = vpop.f32.mrb[30].mxu1 }
 0xc09   : > { %v1693_v11 = vpop.f32.mrb[31].mxu1  ;;  %v1716_v21 = vadd.f32 %v2277_v29, %v1706_v7 }
 0xc0a   : > { %v1714_v14 = vadd.f32 %v2277_v29, %v1704_v8  ;;  %v1705_v16 = vadd.f32 %v1693_v11, %v1466_v1 }
 0xc0b   : > { %v3103_v30 = vadd.f32 %v2696_v28, %v1716_v21  ;;  %v2611_v28 = vld [vmem:[%s3240_s10 + $0x10] sm:$0xff]  }
 0xc0c   : > { %v1715_v17 = vadd.f32 %v2277_v29, %v1705_v16  ;;  %v3095_v20 = vadd.f32 %v2694_v19, %v1714_v14  ;;  %v2279_v29 = vld [vmem:[%s3237_s7] ss:$0 sm:$0xff] }
 0xc0e   : > { %1722 = vadd.xlane.f32.xlu1 %v3095_v20  ;;  %v3099_v23 = vadd.f32 %v2695_v22, %v1715_v17  ;;  %v2610_v22 = vld [vmem:[%s3240_s10 + $0x50] sm:$0xff]  }
 0xc0f   : > { %2377 = vmatprep.subr.bf16.mxu1 %v2610_v22 }
 0xc10   : > { %1724 = vadd.xlane.f32.xlu0 %v3099_v23  ;;  %2378 = vmatpush3.bf16.msra.mxu1 %v2611_v28 }
 0xc11   : > { %2379 = vmatprep.subr.bf16.mxu1 %v2612_v31 }
 0xc14   : > { %1726 = vadd.xlane.f32.xlu0 %v3103_v30 }
 0xc9b   : > { %v1723_v37 = vpop.xlane.xlu1 %1722 }
 0xc9c   : > { %v1728_v38 = vmul.f32 0.0078125, %v1723_v37  ;;  %v2617_v37 = vld [vmem:[%s3240_s10 + $0x28] sm:$0xff]  }
 0xc9d   : > { %v1725_v39 = vpop.xlane.xlu0 %1724 }
 0xc9e   : > { %v1731_v40 = vsub.f32 %v3095_v20, %v1728_v38  ;;  %v1729_v41 = vmul.f32 0.0078125, %v1725_v39  ;;  %v2618_v38 = vld [vmem:[%s3240_s10 + $0x70] sm:$0xff]  }
 0xc9f   : > { %v2619_v39 = vld [vmem:[%s3240_s10 + $0x30] sm:$0xff]  }
 0xca0   : > { %v1732_v42 = vsub.f32 %v3099_v23, %v1729_v41  ;;  %v1734_v43 = vmul.f32 %v1731_v40, %v1731_v40  ;;  %v2621_v41 = vld [vmem:[%s3240_s10 + $0x38] sm:$0xff]  }
 0xca1   : > { %v1727_v44 = vpop.xlane.xlu0 %1726 }
 0xca2   : > { %v1730_v45 = vmul.f32 0.0078125, %v1727_v44  ;;  %1737 = vadd.xlane.f32.xlu1 %v1734_v43  ;;  %v1735_v46 = vmul.f32 %v1732_v42, %v1732_v42  ;;  %v1791_v44 = vld [vmem:[%s3239_s9] sm:$0x3] }
 0xca4   : > { %v1733_v47 = vsub.f32 %v3103_v30, %v1730_v45  ;;  %1739 = vadd.xlane.f32.xlu0 %v1735_v46 }
 0xca6   : > { %v1736_v48 = vmul.f32 %v1733_v47, %v1733_v47 }
 0xca8   : > { %1741 = vadd.xlane.f32.xlu1 %v1736_v48 }
 0xd2f   : > { %v1738_v59 = vpop.xlane.xlu1 %1737 }
 0xd30   : > { %v1743_v60 = vmul.f32 0.0078125, %v1738_v59 }
 0xd31   : > { %v1740_v61 = vpop.xlane.xlu0 %1739 }
 0xd32   : > { %v1746_v62 = vadd.f32 1e-05, %v1743_v60  ;;  %v1744_v63 = vmul.f32 0.0078125, %v1740_v61 }
 0xd34   : > { %2676 = vrsqrt.f32 %v1746_v62  ;;  %v1747_v0 = vadd.f32 1e-05, %v1744_v63 }
 0xd35   : > { %v1742_v1 = vpop.xlane.xlu1 %1741 }
 0xd36   : > { %2678 = vrsqrt.f32 %v1747_v0  ;;  %v1745_v2 = vmul.f32 0.0078125, %v1742_v1 }
 0xd38   : > { %v1748_v3 = vadd.f32 1e-05, %v1745_v2 }
 0xd3a   : > { %2680 = vrsqrt.f32 %v1748_v3 }
 0xd3e   : > { %v2677_v4 = vpop.eup %2676 }
 0xd3f   : > { %v1752_v26 = vmul.f32 %v2677_v4, %v1731_v40  ;;  %v2620_v40 = vld [vmem:[%s3240_s10 + $0x78] sm:$0xff]  }
 0xd40   : > { %v2679_v6 = vpop.eup %2678 }
 0xd41   : > { %v1753_v27 = vmul.f32 %v2679_v6, %v1732_v42  ;;  %v1761_v7 = vmul.f32 %v2278_v5, %v1752_v26  ;;  %v1794_v42 = vshrl.u32 %v749_v25, 7 }
 0xd43   : > { %v1762_v32 = vmul.f32 %v2278_v5, %v1753_v27  ;;  %v1770_v9 = vadd.f32 %v2279_v29, %v1761_v7  ;;  %v1795_v43 = vsub.s32 0, %v1794_v42  ;;  %v1799_v45 = vsub.s32 1, %v1794_v42 }
 0xd44   : > { %v2681_v8 = vpop.eup %2680 }
 0xd45   : > { %v1771_v11 = vadd.f32 %v2279_v29, %v1762_v32  ;;  %v1754_v14 = vmul.f32 %v2681_v8, %v1733_v47  ;;  %v1796_v46 = vrot.slane %v1791_v44, %v1795_v43  ;;  %v1800_v47 = vrot.slane %v1791_v44, %v1799_v45 }
 0xd47   : > { %v1789_v16 = vpack.c.bf16 %v1771_v11, %v1770_v9  ;;  %v1763_v17 = vmul.f32 %v2278_v5, %v1754_v14 }
 0xd49   : > { %1916 = vmatmul.mubr.bf16.vlgmr.msra.gmra.mrb[28].mxu0 %v1789_v16  ;;  %v1772_v19 = vadd.f32 %v2279_v29, %v1763_v17 }
 0xd4a   : > { %1925 = vmatprep.mubr.bf16.mxu0 %v2705_v35  ;;  %v2613_v35 = vld [vmem:[%s3240_s10 + $0x18] sm:$0xff]  }
 0xd4b   : > { %v1790_v21 = vpack.c.bf16 %v1772_v19, %v1772_v19  ;;  %2380 = vmatpush3.bf16.msra.mxu1 %v2613_v35 }
 0xd4c   : > { %2381 = vmatprep.subr.bf16.mxu1 %v2614_v33 }
 0xd4f   : > { %2382 = vmatpush3.bf16.msra.mxu1 %v2615_v34 }
 0xd50   : > { %2383 = vmatprep.subr.bf16.mxu1 %v2616_v36  ;;  %v2296_v36 = vld [vmem:[%s3241_s11] ss:$0 sm:$0xff] }
 0xd51   : > { %1926 = vmatmul.mubr.bf16.gmra.mrb[32].mxu0 %v1790_v21 }
 0xd53   : > { %2384 = vmatpush3.bf16.msra.mxu1 %v2617_v37 }
 0xd54   : > { %2385 = vmatprep.subr.bf16.mxu1 %v2618_v38 }
 0xd57   : > { %2386 = vmatpush3.bf16.msra.mxu1 %v2619_v39 }
 0xd58   : > { %2387 = vmatprep.subr.bf16.mxu1 %v2620_v40 }
 0xd5b   : > { %2388 = vmatpush3.bf16.msra.mxu1 %v2621_v41 }
 0xe1c   : > { %v1917_v48 = vpop.f32.mrb[28].mxu0 }
 0xe1d   : > { %v1918_v49 = vadd.f32 %v1917_v48, %v1796_v46  ;;  %v1919_v50 = vpop.f32.mrb[29].mxu0 }
 0xe1e   : > { %v1920_v51 = vadd.f32 %v1919_v50, %v1800_v47  ;;  %v1921_v52 = vpop.f32.mrb[30].mxu0 }
 0xe1f   : > { %v1940_v53 = vmul.f32 0.70710677, %v1918_v49  ;;  %v1922_v10 = vadd.f32 %v1921_v52, %v1796_v46  ;;  %v1923_v13 = vpop.f32.mrb[31].mxu0  ;;  %v1934_v3 = vmul.f32 0.5, %v1918_v49 }
 0xe20   : > { %v1941_v18 = vmul.f32 0.70710677, %v1920_v51  ;;  %v1924_v54 = vadd.f32 %v1923_v13, %v1800_v47  ;;  %v1935_v26 = vmul.f32 0.5, %v1920_v51 }
 0xe21   : > { %2682 = verf.f32 %v1940_v53  ;;  %v1942_v25 = vmul.f32 0.70710677, %v1922_v10  ;;  %v1936_v4 = vmul.f32 0.5, %v1922_v10 }
 0xe22   : > { %2684 = verf.f32 %v1941_v18  ;;  %v1943_v15 = vmul.f32 0.70710677, %v1924_v54  ;;  %v1937_v6 = vmul.f32 0.5, %v1924_v54 }
 0xe23   : > { %2686 = verf.f32 %v1942_v25 }
 0xe24   : > { %2688 = verf.f32 %v1943_v15  ;;  %v1927_v12 = vpop.f32.mrb[32].mxu0 }
 0xe25   : > { %v1928_v24 = vadd.f32 %v1927_v12, %v1796_v46  ;;  %v1929_v55 = vpop.f32.mrb[33].mxu0 }
 0xe26   : > { %v1930_v56 = vadd.f32 %v1929_v55, %v1800_v47  ;;  %v1931_v57 = vpop.f32.mrb[34].mxu0 }
 0xe27   : > { %v1944_v58 = vmul.f32 0.70710677, %v1928_v24  ;;  %v1932_v59 = vpop.f32.mrb[35].mxu0  ;;  %v1938_v22 = vmul.f32 0.5, %v1928_v24 }
 0xe28   : > { %v1945_v60 = vmul.f32 0.70710677, %v1930_v56  ;;  %v1939_v19 = vmul.f32 0.5, %v1930_v56 }
 0xe29   : > { %2690 = verf.f32 %v1944_v58 }
 0xe2a   : > { %2692 = verf.f32 %v1945_v60 }
 0xe2b   : > { %v2683_v61 = vpop.eup %2682 }
 0xe2c   : > { %v2685_v62 = vpop.eup %2684  ;;  %v1952_v63 = vadd.f32 1.0, %v2683_v61 }
 0xe2d   : > { %v2687_v0 = vpop.eup %2686  ;;  %v1953_v1 = vadd.f32 1.0, %v2685_v62 }
 0xe2e   : > { %v2689_v2 = vpop.eup %2688  ;;  %v1954_v5 = vadd.f32 1.0, %v2687_v0  ;;  %v1958_v7 = vmul.f32 %v1952_v63, %v1934_v3 }
 0xe2f   : > { %v1955_v27 = vadd.f32 1.0, %v2689_v2  ;;  %v1959_v32 = vmul.f32 %v1953_v1, %v1935_v26 }
 0xe30   : > { %v1960_v29 = vmul.f32 %v1954_v5, %v1936_v4 }
 0xe31   : > { %v1961_v8 = vmul.f32 %v1955_v27, %v1937_v6 }
 0xe32   : > { %v1996_v9 = vpack.c.bf16 %v1960_v29, %v1958_v7 }
 0xe33   : > { %v2691_v11 = vpop.eup %2690  ;;  %v1997_v14 = vpack.c.bf16 %v1961_v8, %v1959_v32 }
 0xe34   : > { %v2693_v16 = vpop.eup %2692  ;;  %v1956_v17 = vadd.f32 1.0, %v2691_v11 }
 0xe35   : > { %v1957_v21 = vadd.f32 1.0, %v2693_v16  ;;  %2135 = vmatprep.mubr.bf16.mxu1 %v1997_v14 }
 0xe36   : > { %2136 = vmatmul.mubr.bf16.vlgmr.msra.gmra.mrb[32].mxu1 %v1996_v9  ;;  %v1962_v31 = vmul.f32 %v1956_v17, %v1938_v22 }
 0xe37   : > { %v1963_v28 = vmul.f32 %v1957_v21, %v1939_v19 }
 0xe38   : > { %v1998_v33 = vpack.c.bf16 %v1962_v31, %v1962_v31 }
 0xe39   : > { %v1999_v35 = vpack.c.bf16 %v1963_v28, %v1963_v28 }
 0xe3b   : > { %2143 = vmatprep.mubr.bf16.mxu1 %v1999_v35 }
 0xe3e   : > { %2144 = vmatmul.mubr.bf16.gmra.mrb[36].mxu1 %v1998_v33 }
 0xf09   : > { %v2389_v34 = vpop.f32.mrb[32].mxu1 }
 0xf0a   : > { %v2390_v37 = vpop.f32.mrb[33].mxu1 }
 0xf0b   : > { %v2391_v38 = vadd.f32 %v2390_v37, %v2389_v34  ;;  %v2392_v39 = vpop.f32.mrb[34].mxu1 }
 0xf0c   : > { %v2393_v40 = vpop.f32.mrb[35].mxu1 }
 0xf0d   : > { %v2138_v41 = vadd.f32 %v2391_v38, %v2296_v36  ;;  %v2394_v42 = vadd.f32 %v2393_v40, %v2392_v39 }
 0xf0f   : > { %v2151_v43 = vadd.f32 %v2138_v41, %v3095_v20  ;;  %v2141_v44 = vadd.f32 %v2394_v42, %v2296_v36 }
 0xf11   : > { %2154 = vst [vmem:[%s413_s29] sm:$0xff] %v2151_v43  ;;  %v2152_v45 = vadd.f32 %v2141_v44, %v3099_v23  ;;  %v2395_v46 = vpop.f32.mrb[36].mxu1 }
 0xf12   : > { %v2396_v47 = vpop.f32.mrb[37].mxu1 }
 0xf13   : > { %2155 = vst [vmem:[%s413_s29 + $0x8] sm:$0xff] %v2152_v45  ;;  %v2397_v48 = vadd.f32 %v2396_v47, %v2395_v46  ;;  %v2398_v49 = vpop.f32.mrb[38].mxu1 }
 0xf14   : > { %v2399_v50 = vpop.f32.mrb[39].mxu1 }
 0xf15   : > { %v2146_v51 = vadd.f32 %v2397_v48, %v2296_v36 }
 0xf17   : > { %v2153_v52 = vadd.f32 %v2146_v51, %v3103_v30 }
 0xf19   : > { %2156 = vst [vmem:[%s413_s29 + $0x10] sm:$0xff] %v2153_v52 }
 0xf1a PF: > { %s22_s21 = sadd.s32 1, %s2703_s21  }
 0xf1b   : > { %p19_p4 = scmp.ge.s32.totalorder %s22_s21, 4  }
 0xf1d   :  { %21 = sbr.rel (!%p19_p4) target bundleno = 1 (0x1), region = 98 }

// kernel: _lambda_.7
= control target key start
LH: loop header
LB: loop body
LE: loop exit
PB: predicated region body
PF: predicated region fallthrough
CT: control target
= control target key end

     0   :  { %vm25_vm0 = vcmask 1041408   ;;  %s342_s0 = inlined_call_operand.vmem [shape: f32[2,128], index: 0, kind: input, shape index: {}]   ;;  %s343_s1 = inlined_call_operand.vmem [shape: f32[1,128], index: 1, kind: input, shape index: {}]   ;;  %s344_s2 = inlined_call_operand.vmem [shape: f32[1,128], index: 2, kind: input, shape index: {}]   ;;  %s345_s3 = inlined_call_operand.vmem [shape: bf16[128,10], index: 3, kind: input, shape index: {}]   ;;  %s346_s4 = inlined_call_operand.vmem [shape: f32[1,10], index: 4, kind: input, shape index: {}]   ;;  %s347_s5 = inlined_call_operand.hbm [shape: f32[2,10], index: 5, kind: output, shape index: {}]  }
   0x1   :  { %v22_v0 = vld [vmem:[%s342_s0] sm:$0x3] }
   0x2   :  { %v26_v1 = vsel %vm25_vm0, %v22_v0, 0.0 }
   0x3   :  { %27 = vadd.xlane.f32.xlu0 %v26_v1 }
   0x4   :  { %10 = vsyncpa [#allocation3], 0  ;;  %v225_v2 = vld [vmem:[%s345_s3] sm:$0xff]   ;;  %v259_v3 = vmov 0.0   ;;  %v226_v4 = vld [vmem:[%s345_s3 + $0x8] sm:$0xff]   ;;  %vm260_vm1 = vmmov 0  }
   0x5   :  { %202 = vmatprep.subr.bf16.mxu0 %v259_v3  ;;  %v227_v10 = vld [vmem:[%s345_s3 + $0x10] sm:$0xff]   ;;  %v228_v11 = vld [vmem:[%s345_s3 + $0x18] sm:$0xff]   ;;  %v229_v12 = vld [vmem:[%s345_s3 + $0x20] sm:$0xff]   ;;  %218 = vmatprep.mubr.msk.bf16.mxu0 %vm260_vm1, %v259_v3  ;;  %s261_s15 = smov [#allocation2]   ;;  %vm166_vm2 = vcmask 74752  }
   0x6   :  { %203 = vmatpush3.bf16.msra.mxu0 %v225_v2  ;;  %v230_v13 = vld [vmem:[%s345_s3 + $0x28] sm:$0xff]   ;;  %v231_v14 = vld [vmem:[%s345_s3 + $0x30] sm:$0xff]   ;;  %v232_v15 = vld [vmem:[%s345_s3 + $0x38] sm:$0xff]   ;;  %s174_s16 = sshll.u32 %s261_s15, 4  ;;  %s175_s16 = int_to_ptr.vmem [resolvable:$true] %s174_s16 }
   0x7   :  { %204 = vmatprep.subr.bf16.mxu0 %v259_v3  ;;  %v182_v20 = vld [vmem:[%s343_s1] ss:$0 sm:$0xff]  ;;  %s235_s1 = scalar_lea.vmem %s175_s16, 32  ;;  %p240_p1 = scmp.lt.s32.totalorder %s175_s16, %s175_s16 }
   0x8   :  { %v183_v22 = vld [vmem:[%s344_s2] ss:$0 sm:$0xff]  ;;  %p236_p0 = scmp.ne.s32.totalorder %s175_s16, %s235_s1  ;;  %p241_p2 = scmp.lt.s32.totalorder %s235_s1, %s235_s1 }
   0x9   :  { %v184_v26 = vld [vmem:[%s346_s4] ss:$0 sm:$0xff] }
   0xa   :  { %205 = vmatpush3.bf16.msra.mxu0 %v226_v4  ;;  %p242_p3 = por %p241_p2, %p240_p1 }
   0xb   :  { %206 = vmatprep.subr.bf16.mxu0 %v259_v3 }
   0xc   :  { %p243_p4 = pnand %p242_p3, %p236_p0 }
   0xe   :  { %207 = vmatpush3.bf16.msra.mxu0 %v227_v10 }
   0xf   :  { %208 = vmatprep.subr.bf16.mxu0 %v259_v3 }
  0x12   :  { %209 = vmatpush3.bf16.msra.mxu0 %v228_v11 }
  0x13   :  { %210 = vmatprep.subr.bf16.mxu0 %v259_v3 }
  0x16   :  { %211 = vmatpush3.bf16.msra.mxu0 %v229_v12 }
  0x17   :  { %212 = vmatprep.subr.bf16.mxu0 %v259_v3 }
  0x1a   :  { %213 = vmatpush3.bf16.msra.mxu0 %v230_v13 }
  0x1b   :  { %214 = vmatprep.subr.bf16.mxu0 %v259_v3 }
  0x1e   :  { %215 = vmatpush3.bf16.msra.mxu0 %v231_v14 }
  0x1f   :  { %216 = vmatprep.subr.bf16.mxu0 %v259_v3 }
  0x22   :  { %217 = vmatpush3.bf16.msra.mxu0 %v232_v15 }
  0x90   :  { %v28_v5 = vpop.xlane.xlu0 %27 }
  0x91   :  { %v30_v6 = vmul.f32 0.0078125, %v28_v5 }
  0x93   :  { %v31_v7 = vsub.f32 %v22_v0, %v30_v6 }
  0x95   :  { %v32_v8 = vmul.f32 %v31_v7, %v31_v7 }
  0x97   :  { %v33_v9 = vsel %vm25_vm0, %v32_v8, 0.0 }
  0x98   :  { %34 = vadd.xlane.f32.xlu0 %v33_v9 }
 0x125   :  { %v35_v16 = vpop.xlane.xlu0 %34 }
 0x126   :  { %v36_v17 = vmul.f32 0.0078125, %v35_v16 }
 0x128   :  { %v37_v18 = vadd.f32 1e-05, %v36_v17 }
 0x12a   :  { %233 = vrsqrt.f32 %v37_v18 }
 0x134   :  { %v234_v19 = vpop.eup %233 }
 0x135   :  { %v39_v21 = vmul.f32 %v234_v19, %v31_v7 }
 0x137   :  { %v46_v23 = vmul.f32 %v182_v20, %v39_v21 }
 0x139   :  { %v53_v24 = vadd.f32 %v183_v22, %v46_v23 }
 0x13b   :  { %v70_v25 = vpack.c.bf16 %v53_v24, %v53_v24 }
 0x13d   :  { %219 = vmatmul.mubr.bf16.vlgmr.msra.gmra.mrb[0].mxu0 %v70_v25 }
 0x210   :  { %v160_v27 = vpop.f32.mrb[0].mxu0 }
 0x211   :  { %v161_v28 = vadd.f32 %v184_v26, %v160_v27  ;;  %v220_v29 = vpop.f32.mrb[1].mxu0 }
 0x212   :  { %v163_v30 = vpop.f32.mrb[2].mxu0 }
 0x213   :  { %v221_v31 = vpop.f32.mrb[3].mxu0  ;;  %167 = vst.msk [vmem:[#allocation2] sm:$0x3] %vm166_vm2, %v161_v28 }
 0x214   :  { %246 = shalt.err (!%p243_p4)
}
 0x215   :  { %s247_s4 = scalar_lea.hbm %s347_s5, 32 }
 0x216   :  { %p248_p5 = scmp.ne.s32.totalorder %s347_s5, %s247_s4  ;;  %p251_p6 = scmp.lt.u32.totalorder %s247_s4, %s347_s5 }
 0x218   :  { %p253_p7 = pnand %p251_p6, %p248_p5 }
 0x21a   :  { %256 = shalt.err (!%p253_p7)
}
 0x21b   :  { %177 = dma.vmem_to_hbm [thread:$0]  %s175_s16, 32, %s347_s5, [#allocation3]  }
 0x21c   :  { %257 = dma.done.wait [#allocation3], 32  }
 0x21d   :  { %258 = vsyncadd [#allocation3], 4294967264 }
 0x21e   :  { %181 = vsyncpa [#allocation3], 1 }

</bundles_post_ra>
